<compile_context>
chip_gen: v7x
topology: tpu7x:2x2x1
jax: 0.10.0
libtpu: 0.0.40
codegen_flags: <defaults>
</compile_context>

<pallas_src>
import functools
import math

import jax
import jax.numpy as jnp
from jax import lax
from jax.experimental import pallas as pl
from jax.experimental.pallas import tpu as pltpu


COMPUTE_DTYPE = jnp.bfloat16   # MXU operand / HBM storage dtype
_NEG_INF = -1e30

# Tile-size ceilings (divisor-adjusted per call).
TM_MAX = 256
TN_MAX = 512
TK_MAX = 1024


# ----------------------------- helpers ------------------------------

def _round_up(v, m):
    return (v + m - 1) // m * m


def _pick_tile(dim, unit, max_tile):
    """Largest multiple of `unit` that divides round_up(dim, unit) and is <= max_tile.
    Returns (tile, padded_dim).  Choosing a divisor means no pad/slice copies are
    emitted when `dim` is already a multiple of `unit`."""
    padded = _round_up(dim, unit)
    n = padded // unit
    best = 1
    for d in range(1, n + 1):
        if n % d == 0 and d * unit <= max_tile:
            best = d
    return best * unit, padded


def _pad2d(a, rows, cols):
    r, c = a.shape
    if r == rows and c == cols:
        return a
    return jnp.pad(a, ((0, rows - r), (0, cols - c)))


# ----------------------------- Pallas kernels ------------------------------

def _mm_kernel(x_ref, w_ref, b_ref, o_ref, acc_ref, *, activation):
    """Tiled  out = act(x @ w + b).  Grid = (M/tm, N/tn, K/tk), K innermost.
    Operands stay in their storage dtype (bf16) — MXU accumulates in f32."""
    @pl.when(pl.program_id(2) == 0)
    def _init():
        acc_ref[...] = jnp.zeros_like(acc_ref)

    acc_ref[...] += jnp.dot(x_ref[...], w_ref[...],
                            preferred_element_type=jnp.float32)

    @pl.when(pl.program_id(2) == pl.num_programs(2) - 1)
    def _fin():
        y = acc_ref[...] + b_ref[...].astype(jnp.float32)
        if activation == "quickgelu":
            y = y * jax.nn.sigmoid(1.702 * y)
        o_ref[...] = y.astype(o_ref.dtype)


def _mm_res_kernel(x_ref, w_ref, b_ref, r_ref, o_ref, acc_ref, *, activation):
    """Tiled  out = act(x @ w + b) + residual  (residual add fused in epilogue)."""
    @pl.when(pl.program_id(2) == 0)
    def _init():
        acc_ref[...] = jnp.zeros_like(acc_ref)

    acc_ref[...] += jnp.dot(x_ref[...], w_ref[...],
                            preferred_element_type=jnp.float32)

    @pl.when(pl.program_id(2) == pl.num_programs(2) - 1)
    def _fin():
        y = acc_ref[...] + b_ref[...].astype(jnp.float32)
        if activation == "quickgelu":
            y = y * jax.nn.sigmoid(1.702 * y)
        y = y + r_ref[...].astype(jnp.float32)
        o_ref[...] = y.astype(o_ref.dtype)


def _ln_mm_kernel(x_ref, g_ref, bb_ref, w_ref, b_ref, o_ref, *, eps, activation):
    """Fused  out = act(LayerNorm(x) @ w + b).  Grid = (M/tm, N/tn), K kept whole so
    the LN reduction sees the full row.  LN math in f32; MXU operands in bf16."""
    x = x_ref[...].astype(jnp.float32)
    mu = jnp.mean(x, axis=-1, keepdims=True)
    var = jnp.mean(jnp.square(x - mu), axis=-1, keepdims=True)
    xn = (x - mu) * jax.lax.rsqrt(var + eps)
    xn = xn * g_ref[...].astype(jnp.float32) + bb_ref[...].astype(jnp.float32)
    y = jnp.dot(xn.astype(w_ref.dtype), w_ref[...],
                preferred_element_type=jnp.float32)
    y = y + b_ref[...].astype(jnp.float32)
    if activation == "quickgelu":
        y = y * jax.nn.sigmoid(1.702 * y)
    o_ref[...] = y.astype(o_ref.dtype)


def _ln_kernel(x_ref, g_ref, b_ref, o_ref, *, eps):
    """Row-tiled LayerNorm over the last dim (f32 math, bf16 storage)."""
    x = x_ref[...].astype(jnp.float32)
    mu = jnp.mean(x, axis=-1, keepdims=True)
    var = jnp.mean(jnp.square(x - mu), axis=-1, keepdims=True)
    y = (x - mu) * jax.lax.rsqrt(var + eps)
    y = y * g_ref[...].astype(jnp.float32) + b_ref[...].astype(jnp.float32)
    o_ref[...] = y.astype(o_ref.dtype)


def _attn_head(q, k, v, scale, key_ok):
    """Single-head attention.  q,k,v: (Lp, dh) bf16.  Scores/softmax in f32, P cast to
    bf16 for the MXU, softmax denominator applied to the (Lp, dh) output via EUP."""
    s = lax.dot_general(q, k, (((1,), (1,)), ((), ())),
                        preferred_element_type=jnp.float32)   # Q @ K^T, no transpose
    s = s * scale
    if key_ok is not None:
        s = jnp.where(key_ok, s, _NEG_INF)
    m = jnp.max(s, axis=-1, keepdims=True)
    p = jnp.exp(s - m)
    denom = jnp.sum(p, axis=-1, keepdims=True)                # (Lp, 1) f32
    o = jnp.dot(p.astype(v.dtype), v, preferred_element_type=jnp.float32)
    return o * pl.reciprocal(denom, approx=True)


def _attn_group_kernel(q_ref, k_ref, v_ref, o_ref, *, hpg, dh, l_real, scale):
    """Grid = (B, n_groups).  Each step handles `hpg` heads whose q/k/v columns form a
    single 128-lane-aligned block delivered by BlockSpec.  Per-head outputs are stored
    directly into the group's output block."""
    lp = q_ref.shape[1]
    key_ok = None
    if lp > l_real:  # static at trace time
        key_ok = lax.broadcasted_iota(jnp.int32, (1, lp), 1) < l_real
    for i in range(hpg):
        q = q_ref[0, :, i * dh:(i + 1) * dh]
        k = k_ref[0, :, i * dh:(i + 1) * dh]
        v = v_ref[0, :, i * dh:(i + 1) * dh]
        o_ref[0, :, i * dh:(i + 1) * dh] = _attn_head(q, k, v, scale,
                                                      key_ok).astype(o_ref.dtype)


def _attn_full_kernel(qkv_ref, o_ref, *, heads, dh, l_real, scale):
    """Fallback for widths that are not 128-lane groupable.  Grid = (B,); heads are a
    static Python loop, but q/k/v are sliced per head from the ref and each head's
    output is stored directly (no big live value, no concatenate)."""
    lp = qkv_ref.shape[1]
    d_model = heads * dh
    key_ok = None
    if lp > l_real:
        key_ok = lax.broadcasted_iota(jnp.int32, (1, lp), 1) < l_real
    for h in range(heads):
        q = qkv_ref[0, :, h * dh:(h + 1) * dh]
        k = qkv_ref[0, :, d_model + h * dh:d_model + (h + 1) * dh]
        v = qkv_ref[0, :, 2 * d_model + h * dh:2 * d_model + (h + 1) * dh]
        o_ref[0, :, h * dh:(h + 1) * dh] = _attn_head(q, k, v, scale,
                                                      key_ok).astype(o_ref.dtype)


# ----------------------------- Pallas wrappers ------------------------------

def pallas_matmul(x, w, b=None, residual=None, activation=None,
                  tm_max=TM_MAX, tn_max=TN_MAX, tk_max=TK_MAX):
    """Tiled matmul with fused bias / activation / residual epilogue.
    x: (M, K), w: (K, N), b: (N,)|None, residual: (M, N)|None -> (M, N)."""
    M, K = x.shape
    Kw, N = w.shape
    assert K == Kw
    dt = x.dtype
    esz = jnp.dtype(dt).itemsize

    tm, Mp = _pick_tile(M, 8, tm_max)
    tn, Np = _pick_tile(N, 128, tn_max)
    tk, Kp = _pick_tile(K, 128, tk_max)

    xp = _pad2d(x, Mp, Kp)
    wp = _pad2d(w, Kp, Np)
    bias = b if b is not None else jnp.zeros((N,), dt)
    bp = _pad2d(bias.reshape(1, N), 1, Np)

    grid = (Mp // tm, Np // tn, Kp // tk)
    in_specs = [pl.BlockSpec((tm, tk), lambda i, j, k: (i, k)),
                pl.BlockSpec((tk, tn), lambda i, j, k: (k, j)),
                pl.BlockSpec((1, tn), lambda i, j, k: (0, j))]
    args = [xp, wp, bp]
    flops = 2 * Mp * Np * Kp
    bytes_acc = esz * (Mp * Kp + Kp * Np + Mp * Np)

    if residual is not None:
        args.append(_pad2d(residual, Mp, Np))
        in_specs.append(pl.BlockSpec((tm, tn), lambda i, j, k: (i, j)))
        bytes_acc += esz * Mp * Np
        kern = functools.partial(_mm_res_kernel, activation=activation)
    else:
        kern = functools.partial(_mm_kernel, activation=activation)

    out = pl.pallas_call(
        kern,
        grid=grid,
        in_specs=in_specs,
        out_specs=pl.BlockSpec((tm, tn), lambda i, j, k: (i, j)),
        out_shape=jax.ShapeDtypeStruct((Mp, Np), dt),
        scratch_shapes=[pltpu.VMEM((tm, tn), jnp.float32)],
        compiler_params=pltpu.CompilerParams(
            dimension_semantics=("parallel", "parallel", "arbitrary")),
        cost_estimate=pl.CostEstimate(
            flops=flops,
            transcendentals=(Mp * Np if activation == "quickgelu" else 0),
            bytes_accessed=bytes_acc),
    )(*args)
    if Mp == M and Np == N:
        return out
    return out[:M, :N]


def pallas_ln_matmul(x, gamma, beta, w, b=None, activation=None, eps=1e-5,
                     tm_max=TM_MAX, tn_max=TN_MAX):
    """Fused  act(LayerNorm(x) @ w + b).  K (= feature dim) kept whole so the LN
    reduction sees the full row; M/N tiled with divisor tiles (no pad at CLIP dims)."""
    M, K = x.shape
    Kw, N = w.shape
    assert K == Kw
    dt = x.dtype
    esz = jnp.dtype(dt).itemsize

    tm, Mp = _pick_tile(M, 8, tm_max)
    tn, Np = _pick_tile(N, 128, tn_max)

    xp = _pad2d(x, Mp, K)
    wp = _pad2d(w, K, Np)
    bias = b if b is not None else jnp.zeros((N,), dt)
    bp = _pad2d(bias.reshape(1, N), 1, Np)

    out = pl.pallas_call(
        functools.partial(_ln_mm_kernel, eps=eps, activation=activation),
        grid=(Mp // tm, Np // tn),
        in_specs=[pl.BlockSpec((tm, K), lambda i, j: (i, 0)),
                  pl.BlockSpec((1, K), lambda i, j: (0, 0)),
                  pl.BlockSpec((1, K), lambda i, j: (0, 0)),
                  pl.BlockSpec((K, tn), lambda i, j: (0, j)),
                  pl.BlockSpec((1, tn), lambda i, j: (0, j))],
        out_specs=pl.BlockSpec((tm, tn), lambda i, j: (i, j)),
        out_shape=jax.ShapeDtypeStruct((Mp, Np), dt),
        compiler_params=pltpu.CompilerParams(
            dimension_semantics=("parallel", "parallel")),
        cost_estimate=pl.CostEstimate(
            flops=2 * Mp * Np * K + 8 * Mp * K,
            transcendentals=(Mp * Np if activation == "quickgelu" else 0),
            bytes_accessed=esz * (Mp * K + K * Np + Mp * Np)),
    )(xp, gamma.reshape(1, K), beta.reshape(1, K), wp, bp)
    if Mp == M and Np == N:
        return out
    return out[:M, :N]


def pallas_layernorm(x, gamma, beta, eps=1e-5, tm_max=TM_MAX):
    """Row-tiled standalone LayerNorm.  x: (M, D)."""
    M, D = x.shape
    tm, Mp = _pick_tile(M, 8, tm_max)
    xp = _pad2d(x, Mp, D)
    out = pl.pallas_call(
        functools.partial(_ln_kernel, eps=eps),
        grid=(Mp // tm,),
        in_specs=[pl.BlockSpec((tm, D), lambda i: (i, 0)),
                  pl.BlockSpec((1, D), lambda i: (0, 0)),
                  pl.BlockSpec((1, D), lambda i: (0, 0))],
        out_specs=pl.BlockSpec((tm, D), lambda i: (i, 0)),
        out_shape=jax.ShapeDtypeStruct((Mp, D), x.dtype),
        compiler_params=pltpu.CompilerParams(dimension_semantics=("parallel",)),
    )(xp, gamma.reshape(1, D), beta.reshape(1, D))
    return out if Mp == M else out[:M]


def pallas_attention(qkv, *, heads, l_real):
    """qkv: (B, Lp, 3*D) packed QKV projection -> (B, Lp, D) attention output."""
    B, Lp, three_d = qkv.shape
    D = three_d // 3
    dh = D // heads
    scale = 1.0 / math.sqrt(dh)

    flops = 4 * B * heads * Lp * Lp * dh
    transc = B * heads * Lp * Lp
    bytes_acc = jnp.dtype(qkv.dtype).itemsize * 4 * B * Lp * D

    # Prefer 128-lane-aligned head groups: grid (B, n_groups), per-group BlockSpecs.
    grouped = False
    if dh % 128 == 0:
        gw, hpg, grouped = dh, 1, True
    elif D % 128 == 0 and 128 % dh == 0 and heads % (128 // dh) == 0:
        hpg = 128 // dh
        gw, grouped = 128, True

    if grouped:
        n_groups = heads // hpg
        return pl.pallas_call(
            functools.partial(_attn_group_kernel, hpg=hpg, dh=dh,
                              l_real=l_real, scale=scale),
            grid=(B, n_groups),
            in_specs=[
                pl.BlockSpec((1, Lp, gw), lambda b, g: (b, 0, g)),
                pl.BlockSpec((1, Lp, gw), lambda b, g, ng=n_groups: (b, 0, g + ng)),
                pl.BlockSpec((1, Lp, gw), lambda b, g, ng=n_groups: (b, 0, g + 2 * ng)),
            ],
            out_specs=pl.BlockSpec((1, Lp, gw), lambda b, g: (b, 0, g)),
            out_shape=jax.ShapeDtypeStruct((B, Lp, D), qkv.dtype),
            compiler_params=pltpu.CompilerParams(
                dimension_semantics=("parallel", "parallel")),
            cost_estimate=pl.CostEstimate(flops=flops, transcendentals=transc,
                                          bytes_accessed=bytes_acc),
        )(qkv, qkv, qkv)

    # Fallback: whole packed qkv per batch element, static per-head slicing.
    return pl.pallas_call(
        functools.partial(_attn_full_kernel, heads=heads, dh=dh,
                          l_real=l_real, scale=scale),
        grid=(B,),
        in_specs=[pl.BlockSpec((1, Lp, three_d), lambda b: (b, 0, 0))],
        out_specs=pl.BlockSpec((1, Lp, D), lambda b: (b, 0, 0)),
        out_shape=jax.ShapeDtypeStruct((B, Lp, D), qkv.dtype),
        compiler_params=pltpu.CompilerParams(dimension_semantics=("parallel",)),
        cost_estimate=pl.CostEstimate(flops=flops, transcendentals=transc,
                                      bytes_accessed=bytes_acc),
    )(qkv)


# ----------------------------- Model forward ------------------------------

def residual_attention_block(x2d, p, *, heads, batch, lp, l_real):
    """x2d: (B*Lp, D).  CLIP ResidualAttentionBlock:
       x = x + out_proj(MHA(LN1(x)));  x = x + cproj(QuickGELU(fc(LN2(x))))."""
    D = x2d.shape[1]

    # LN1 fused into the QKV projection; output stays packed (B*Lp, 3D).
    qkv = pallas_ln_matmul(x2d, p["ln1_g"], p["ln1_b"],
                           p["in_proj_w"], p["in_proj_b"])
    attn = pallas_attention(qkv.reshape(batch, lp, 3 * D),
                            heads=heads, l_real=l_real).reshape(batch * lp, D)
    # out-proj with residual add fused into the epilogue.
    x2d = pallas_matmul(attn, p["out_proj_w"], p["out_proj_b"], residual=x2d)

    # LN2 + fc + QuickGELU fused; cproj with residual add fused.
    h = pallas_ln_matmul(x2d, p["ln2_g"], p["ln2_b"],
                         p["fc_w"], p["fc_b"], activation="quickgelu")
    x2d = pallas_matmul(h, p["cproj_w"], p["cproj_b"], residual=x2d)
    return x2d


@functools.partial(jax.jit, static_argnames=("patch_size", "heads", "pos_emb"))
def custom_vision_transformer_forward(params, x, image_prefix, *,
                                      patch_size, heads, pos_emb=True):
    """Reproduces CustomVisionTransformer.forward (deep_embs=None path).
    Sequences are kept batch-first; mathematically identical to the (L, B, D)
    permutation in the PyTorch module."""
    compute_dtype = params["class_embedding"].dtype
    x = x.astype(compute_dtype)
    image_prefix = image_prefix.astype(compute_dtype)

    B, C, H, W = x.shape
    ps = patch_size
    width = params["class_embedding"].shape[0]
    g = H // ps

    # conv1 (stride == kernel, no bias) == patch extraction + matmul.
    patches = (x.reshape(B, C, g, ps, g, ps)
                 .transpose(0, 2, 4, 1, 3, 5)            # (B, gh, gw, C, ps, ps)
                 .reshape(B * g * g, C * ps * ps))
    w_conv = params["conv1_w"].reshape(width, C * ps * ps).T
    feat = pallas_matmul(patches, w_conv).reshape(B, g * g, width)

    # class token + positional embedding.
    cls = jnp.broadcast_to(params["class_embedding"].astype(compute_dtype),
                           (B, 1, width))
    xs = jnp.concatenate([cls, feat], axis=1)
    if pos_emb:
        xs = xs + params["positional_embedding"][None].astype(xs.dtype)

    # image_prefix right after the class token.
    xs = jnp.concatenate([xs[:, :1, :], image_prefix, xs[:, 1:, :]], axis=1)

    # pad sequence once to a multiple of 8; pad keys are masked inside attention.
    L = xs.shape[1]
    Lp = _round_up(L, 8)
    if Lp != L:
        xs = jnp.pad(xs, ((0, 0), (0, Lp - L), (0, 0)))

    # ln_pre (row-tiled standalone LN, since its output is the residual stream).
    x2d = pallas_layernorm(xs.reshape(B * Lp, width),
                           params["ln_pre_g"], params["ln_pre_b"])

    # transformer
    for blk in params["blocks"]:
        x2d = residual_attention_block(x2d, blk, heads=heads,
                                       batch=B, lp=Lp, l_real=L)

    # ln_post on CLS token fused with the output projection.
    cls_tok = x2d.reshape(B, Lp, width)[:, 0, :]
    out = pallas_ln_matmul(cls_tok, params["ln_post_g"], params["ln_post_b"],
                           params["proj"])
    return out.astype(jnp.float32)


# ----------------------------- Parameter init ------------------------------

def init_params(key, *, in_ch, patch_size, width, heads, layers, n_patches,
                output_dim):
    del heads  # layout-independent; heads passed statically to the forward
    keys = jax.random.split(key, 8 + layers)
    s = 0.02
    params = {
        "conv1_w": s * jax.random.normal(
            keys[0], (width, in_ch, patch_size, patch_size), jnp.float32),
        "class_embedding": s * jax.random.normal(keys[1], (width,), jnp.float32),
        "positional_embedding": s * jax.random.normal(
            keys[2], (n_patches + 1, width), jnp.float32),
        "ln_pre_g": jnp.ones((width,), jnp.float32),
        "ln_pre_b": jnp.zeros((width,), jnp.float32),
        "ln_post_g": jnp.ones((width,), jnp.float32),
        "ln_post_b": jnp.zeros((width,), jnp.float32),
        "proj": s * jax.random.normal(keys[3], (width, output_dim), jnp.float32),
        "blocks": [],
    }
    for i in range(layers):
        bk = jax.random.split(keys[8 + i], 6)
        params["blocks"].append({
            "ln1_g": jnp.ones((width,), jnp.float32),
            "ln1_b": jnp.zeros((width,), jnp.float32),
            "ln2_g": jnp.ones((width,), jnp.float32),
            "ln2_b": jnp.zeros((width,), jnp.float32),
            "in_proj_w": s * jax.random.normal(bk[0], (width, 3 * width), jnp.float32),
            "in_proj_b": jnp.zeros((3 * width,), jnp.float32),
            "out_proj_w": s * jax.random.normal(bk[1], (width, width), jnp.float32),
            "out_proj_b": jnp.zeros((width,), jnp.float32),
            "fc_w": s * jax.random.normal(bk[2], (width, 4 * width), jnp.float32),
            "fc_b": jnp.zeros((4 * width,), jnp.float32),
            "cproj_w": s * jax.random.normal(bk[3], (4 * width, width), jnp.float32),
            "cproj_b": jnp.zeros((width,), jnp.float32),
        })
    return params


# ----------------------------- Main ------------------------------

if __name__ == "__main__":
    # Small, self-consistent configuration (dh=64 like CLIP so the lane-aligned
    # grouped attention path is exercised).
    B = 2
    IN_CH = 3
    RES = 16           # input_resolution
    PATCH = 8          # patch size -> 2x2 grid -> 4 patches
    WIDTH = 128
    HEADS = 2          # head dim 64, heads packed 2-per-128-lane group
    LAYERS = 2
    OUT_DIM = 64
    N_PREFIX = 2       # image_prefix tokens
    N_PATCHES = (RES // PATCH) ** 2

    key = jax.random.PRNGKey(0)
    k_param, k_img, k_pref = jax.random.split(key, 3)

    params = init_params(
        k_param, in_ch=IN_CH, patch_size=PATCH, width=WIDTH, heads=HEADS,
        layers=LAYERS, n_patches=N_PATCHES, output_dim=OUT_DIM,
    )
    # Store weights in bf16 once (MXU operands / HBM traffic halved);
    # LN / softmax / accumulation stay f32 inside the kernels.
    params = jax.tree_util.tree_map(lambda a: a.astype(COMPUTE_DTYPE), params)

    x = jax.random.normal(k_img, (B, IN_CH, RES, RES), jnp.float32)          # NCHW
    image_prefix = jax.random.normal(k_pref, (B, N_PREFIX, WIDTH), jnp.float32)

    out = custom_vision_transformer_forward(
        params, x, image_prefix, patch_size=PATCH, heads=HEADS, pos_emb=True)
    out = jax.block_until_ready(out)

    assert out.shape == (B, OUT_DIM), out.shape
    assert bool(jnp.all(jnp.isfinite(out)))
    print("KERNEL_OK")
</pallas_src>

<mosaic_0001>
module attributes {stable_mosaic.version = 11 : i64} {
  func.func @_mm_kernel(%arg0: i32, %arg1: i32, %arg2: i32, %arg3: memref<8x256xbf16, #tpu.memory_space<vmem>>, %arg4: memref<256x128xbf16, #tpu.memory_space<vmem>>, %arg5: memref<1x128xbf16, #tpu.memory_space<vmem>>, %arg6: memref<8x128xbf16, #tpu.memory_space<vmem>>, %arg7: memref<8x128xf32, #tpu.memory_space<vmem>>) attributes {dimension_semantics = [#tpu.dimension_semantics<parallel>, #tpu.dimension_semantics<parallel>, #tpu.dimension_semantics<arbitrary>], iteration_bounds = array<i64: 1, 1, 1>, scalar_prefetch = 0 : i64, scratch_operands = 1 : i64, tpu.core_type = #tpu.core_type<tc>, window_params = [{transform_indices = @transform_0, window_bounds = array<i64: 8, 256>}, {transform_indices = @transform_1, window_bounds = array<i64: 256, 128>}, {transform_indices = @transform_2, window_bounds = array<i64: 1, 128>}, {transform_indices = @transform_3, window_bounds = array<i64: 8, 128>}]} {
    %c0_i32 = arith.constant 0 : i32
    %0 = arith.cmpi eq, %arg2, %c0_i32 : i32
    %1 = arith.extui %0 : i1 to i32
    %c0_i32_0 = arith.constant 0 : i32
    %2 = arith.cmpi ne, %1, %c0_i32_0 : i32
    scf.if %2 {
      %cst_10 = arith.constant 0.000000e+00 : f32
      %12 = vector.broadcast %cst_10 : f32 to vector<8x128xf32>
      %c0_11 = arith.constant 0 : index
      %c0_12 = arith.constant 0 : index
      %13 = vector.load %arg7[%c0_11, %c0_12] : memref<8x128xf32, #tpu.memory_space<vmem>>, vector<8x128xf32>
      tpu.vector_store %arg7[%c0_11, %c0_12], %12 {strides = array<i32>} : memref<8x128xf32, #tpu.memory_space<vmem>>, vector<8x128xf32>,
    } else {
    }
    %c0 = arith.constant 0 : index
    %c0_1 = arith.constant 0 : index
    %3 = vector.load %arg7[%c0, %c0_1] : memref<8x128xf32, #tpu.memory_space<vmem>>, vector<8x128xf32>
    %c0_2 = arith.constant 0 : index
    %c0_3 = arith.constant 0 : index
    %4 = vector.load %arg3[%c0_2, %c0_3] : memref<8x256xbf16, #tpu.memory_space<vmem>>, vector<8x256xbf16>
    %c0_4 = arith.constant 0 : index
    %c0_5 = arith.constant 0 : index
    %5 = vector.load %arg4[%c0_4, %c0_5] : memref<256x128xbf16, #tpu.memory_space<vmem>>, vector<256x128xbf16>
    %cst = arith.constant dense<0.000000e+00> : vector<8x128xf32>
    %6 = tpu.matmul %4, %5, %cst {dimension_numbers = #tpu.dot_dimension_numbers<[1], [0], [0], [1], [0, 0, 1, 1], [], []>} : vector<8x256xbf16>, vector<256x128xbf16>, vector<8x128xf32> -> vector<8x128xf32>
    %7 = arith.addf %3, %6 : vector<8x128xf32>
    %c0_6 = arith.constant 0 : index
    %c0_7 = arith.constant 0 : index
    %8 = vector.load %arg7[%c0_6, %c0_7] : memref<8x128xf32, #tpu.memory_space<vmem>>, vector<8x128xf32>
    tpu.vector_store %arg7[%c0_6, %c0_7], %7 {strides = array<i32>} : memref<8x128xf32, #tpu.memory_space<vmem>>, vector<8x128xf32>,
    %c0_i32_8 = arith.constant 0 : i32
    %9 = arith.cmpi eq, %arg2, %c0_i32_8 : i32
    %10 = arith.extui %9 : i1 to i32
    %c0_i32_9 = arith.constant 0 : i32
    %11 = arith.cmpi ne, %10, %c0_i32_9 : i32
    scf.if %11 {
      %c0_10 = arith.constant 0 : index
      %c0_11 = arith.constant 0 : index
      %12 = vector.load %arg7[%c0_10, %c0_11] : memref<8x128xf32, #tpu.memory_space<vmem>>, vector<8x128xf32>
      %c0_12 = arith.constant 0 : index
      %c0_13 = arith.constant 0 : index
      %13 = vector.load %arg5[%c0_12, %c0_13] : memref<1x128xbf16, #tpu.memory_space<vmem>>, vector<1x128xbf16>
      %14 = arith.extf %13 : vector<1x128xbf16> to vector<1x128xf32>
      %15 = vector.broadcast %14 : vector<1x128xf32> to vector<8x128xf32>
      %16 = arith.addf %12, %15 : vector<8x128xf32>
      %17 = arith.truncf %16 : vector<8x128xf32> to vector<8x128xbf16>
      %c0_14 = arith.constant 0 : index
      %c0_15 = arith.constant 0 : index
      %18 = vector.load %arg6[%c0_14, %c0_15] : memref<8x128xbf16, #tpu.memory_space<vmem>>, vector<8x128xbf16>
      tpu.vector_store %arg6[%c0_14, %c0_15], %17 {strides = array<i32>} : memref<8x128xbf16, #tpu.memory_space<vmem>>, vector<8x128xbf16>,
    } else {
    }
    return
  }
  func.func @transform_0(%arg0: i32, %arg1: i32, %arg2: i32) -> (i32, i32) {
    %c0_i32 = arith.constant 0 : i32
    return %arg0, %arg2 : i32, i32
  }
  func.func @transform_1(%arg0: i32, %arg1: i32, %arg2: i32) -> (i32, i32) {
    %c0_i32 = arith.constant 0 : i32
    return %arg2, %arg1 : i32, i32
  }
  func.func @transform_2(%arg0: i32, %arg1: i32, %arg2: i32) -> (i32, i32) {
    %c0_i32 = arith.constant 0 : i32
    %c0_i32_0 = arith.constant 0 : i32
    return %c0_i32, %arg1 : i32, i32
  }
  func.func @transform_3(%arg0: i32, %arg1: i32, %arg2: i32) -> (i32, i32) {
    %c0_i32 = arith.constant 0 : i32
    return %arg0, %arg1 : i32, i32
  }
}

module attributes {stable_mosaic.version = 11 : i64} {
  func.func @_ln_kernel(%arg0: i32, %arg1: memref<16x128xbf16, #tpu.memory_space<vmem>>, %arg2: memref<1x128xbf16, #tpu.memory_space<vmem>>, %arg3: memref<1x128xbf16, #tpu.memory_space<vmem>>, %arg4: memref<16x128xbf16, #tpu.memory_space<vmem>>) attributes {dimension_semantics = [#tpu.dimension_semantics<parallel>], iteration_bounds = array<i64: 1>, scalar_prefetch = 0 : i64, scratch_operands = 0 : i64, tpu.core_type = #tpu.core_type<tc>, window_params = [{transform_indices = @transform_0, window_bounds = array<i64: 16, 128>}, {pipeline_mode = #tpu.pipeline_mode<synchronous>, transform_indices = @transform_1, window_bounds = array<i64: 1, 128>}, {pipeline_mode = #tpu.pipeline_mode<synchronous>, transform_indices = @transform_2, window_bounds = array<i64: 1, 128>}, {transform_indices = @transform_3, window_bounds = array<i64: 16, 128>}]} {
    %c0 = arith.constant 0 : index
    %c0_0 = arith.constant 0 : index
    %0 = vector.load %arg1[%c0, %c0_0] : memref<16x128xbf16, #tpu.memory_space<vmem>>, vector<16x128xbf16>
    %1 = arith.extf %0 : vector<16x128xbf16> to vector<16x128xf32>
    %cst = arith.constant dense<0.000000e+00> : vector<16xf32>
    %2 = vector.multi_reduction <add>, %1, %cst [1] : vector<16x128xf32> to vector<16xf32>
    %3 = vector.shape_cast %2 : vector<16xf32> to vector<16x1xf32>
    %cst_1 = arith.constant 1.280000e+02 : f32
    %4 = vector.broadcast %cst_1 : f32 to vector<16x1xf32>
    %5 = arith.divf %3, %4 : vector<16x1xf32>
    %6 = vector.broadcast %5 : vector<16x1xf32> to vector<16x128xf32>
    %7 = arith.subf %1, %6 : vector<16x128xf32>
    %8 = arith.mulf %7, %7 : vector<16x128xf32>
    %cst_2 = arith.constant dense<0.000000e+00> : vector<16xf32>
    %9 = vector.multi_reduction <add>, %8, %cst_2 [1] : vector<16x128xf32> to vector<16xf32>
    %10 = vector.shape_cast %9 : vector<16xf32> to vector<16x1xf32>
    %cst_3 = arith.constant 1.280000e+02 : f32
    %11 = vector.broadcast %cst_3 : f32 to vector<16x1xf32>
    %12 = arith.divf %10, %11 : vector<16x1xf32>
    %13 = vector.broadcast %5 : vector<16x1xf32> to vector<16x128xf32>
    %14 = arith.subf %1, %13 : vector<16x128xf32>
    %cst_4 = arith.constant 9.99999974E-6 : f32
    %15 = vector.broadcast %cst_4 : f32 to vector<16x1xf32>
    %16 = arith.addf %12, %15 : vector<16x1xf32>
    %17 = math.rsqrt %16 : vector<16x1xf32>
    %18 = vector.broadcast %17 : vector<16x1xf32> to vector<16x128xf32>
    %19 = arith.mulf %14, %18 : vector<16x128xf32>
    %c0_5 = arith.constant 0 : index
    %c0_6 = arith.constant 0 : index
    %20 = vector.load %arg2[%c0_5, %c0_6] : memref<1x128xbf16, #tpu.memory_space<vmem>>, vector<1x128xbf16>
    %21 = arith.extf %20 : vector<1x128xbf16> to vector<1x128xf32>
    %22 = vector.broadcast %21 : vector<1x128xf32> to vector<16x128xf32>
    %23 = arith.mulf %19, %22 : vector<16x128xf32>
    %c0_7 = arith.constant 0 : index
    %c0_8 = arith.constant 0 : index
    %24 = vector.load %arg3[%c0_7, %c0_8] : memref<1x128xbf16, #tpu.memory_space<vmem>>, vector<1x128xbf16>
    %25 = arith.extf %24 : vector<1x128xbf16> to vector<1x128xf32>
    %26 = vector.broadcast %25 : vector<1x128xf32> to vector<16x128xf32>
    %27 = arith.addf %23, %26 : vector<16x128xf32>
    %28 = arith.truncf %27 : vector<16x128xf32> to vector<16x128xbf16>
    %c0_9 = arith.constant 0 : index
    %c0_10 = arith.constant 0 : index
    %29 = vector.load %arg4[%c0_9, %c0_10] : memref<16x128xbf16, #tpu.memory_space<vmem>>, vector<16x128xbf16>
    tpu.vector_store %arg4[%c0_9, %c0_10], %28 {strides = array<i32>} : memref<16x128xbf16, #tpu.memory_space<vmem>>, vector<16x128xbf16>,
    return
  }
  func.func @transform_0(%arg0: i32) -> (i32, i32) {
    %c0_i32 = arith.constant 0 : i32
    %c0_i32_0 = arith.constant 0 : i32
    return %arg0, %c0_i32 : i32, i32
  }
  func.func @transform_1(%arg0: i32) -> (i32, i32) {
    %c0_i32 = arith.constant 0 : i32
    %c0_i32_0 = arith.constant 0 : i32
    %c0_i32_1 = arith.constant 0 : i32
    return %c0_i32, %c0_i32_0 : i32, i32
  }
  func.func @transform_2(%arg0: i32) -> (i32, i32) {
    %c0_i32 = arith.constant 0 : i32
    %c0_i32_0 = arith.constant 0 : i32
    %c0_i32_1 = arith.constant 0 : i32
    return %c0_i32, %c0_i32_0 : i32, i32
  }
  func.func @transform_3(%arg0: i32) -> (i32, i32) {
    %c0_i32 = arith.constant 0 : i32
    %c0_i32_0 = arith.constant 0 : i32
    return %arg0, %c0_i32 : i32, i32
  }
}

module attributes {stable_mosaic.version = 11 : i64} {
  func.func @_ln_mm_kernel(%arg0: i32, %arg1: i32, %arg2: memref<16x128xbf16, #tpu.memory_space<vmem>>, %arg3: memref<1x128xbf16, #tpu.memory_space<vmem>>, %arg4: memref<1x128xbf16, #tpu.memory_space<vmem>>, %arg5: memref<128x384xbf16, #tpu.memory_space<vmem>>, %arg6: memref<1x384xbf16, #tpu.memory_space<vmem>>, %arg7: memref<16x384xbf16, #tpu.memory_space<vmem>>) attributes {dimension_semantics = [#tpu.dimension_semantics<parallel>, #tpu.dimension_semantics<parallel>], iteration_bounds = array<i64: 1, 1>, scalar_prefetch = 0 : i64, scratch_operands = 0 : i64, tpu.core_type = #tpu.core_type<tc>, window_params = [{transform_indices = @transform_0, window_bounds = array<i64: 16, 128>}, {pipeline_mode = #tpu.pipeline_mode<synchronous>, transform_indices = @transform_1, window_bounds = array<i64: 1, 128>}, {pipeline_mode = #tpu.pipeline_mode<synchronous>, transform_indices = @transform_2, window_bounds = array<i64: 1, 128>}, {transform_indices = @transform_3, window_bounds = array<i64: 128, 384>}, {transform_indices = @transform_4, window_bounds = array<i64: 1, 384>}, {transform_indices = @transform_5, window_bounds = array<i64: 16, 384>}]} {
    %c0 = arith.constant 0 : index
    %c0_0 = arith.constant 0 : index
    %0 = vector.load %arg2[%c0, %c0_0] : memref<16x128xbf16, #tpu.memory_space<vmem>>, vector<16x128xbf16>
    %1 = arith.extf %0 : vector<16x128xbf16> to vector<16x128xf32>
    %cst = arith.constant dense<0.000000e+00> : vector<16xf32>
    %2 = vector.multi_reduction <add>, %1, %cst [1] : vector<16x128xf32> to vector<16xf32>
    %3 = vector.shape_cast %2 : vector<16xf32> to vector<16x1xf32>
    %cst_1 = arith.constant 1.280000e+02 : f32
    %4 = vector.broadcast %cst_1 : f32 to vector<16x1xf32>
    %5 = arith.divf %3, %4 : vector<16x1xf32>
    %6 = vector.broadcast %5 : vector<16x1xf32> to vector<16x128xf32>
    %7 = arith.subf %1, %6 : vector<16x128xf32>
    %8 = arith.mulf %7, %7 : vector<16x128xf32>
    %cst_2 = arith.constant dense<0.000000e+00> : vector<16xf32>
    %9 = vector.multi_reduction <add>, %8, %cst_2 [1] : vector<16x128xf32> to vector<16xf32>
    %10 = vector.shape_cast %9 : vector<16xf32> to vector<16x1xf32>
    %cst_3 = arith.constant 1.280000e+02 : f32
    %11 = vector.broadcast %cst_3 : f32 to vector<16x1xf32>
    %12 = arith.divf %10, %11 : vector<16x1xf32>
    %13 = vector.broadcast %5 : vector<16x1xf32> to vector<16x128xf32>
    %14 = arith.subf %1, %13 : vector<16x128xf32>
    %cst_4 = arith.constant 9.99999974E-6 : f32
    %15 = vector.broadcast %cst_4 : f32 to vector<16x1xf32>
    %16 = arith.addf %12, %15 : vector<16x1xf32>
    %17 = math.rsqrt %16 : vector<16x1xf32>
    %18 = vector.broadcast %17 : vector<16x1xf32> to vector<16x128xf32>
    %19 = arith.mulf %14, %18 : vector<16x128xf32>
    %c0_5 = arith.constant 0 : index
    %c0_6 = arith.constant 0 : index
    %20 = vector.load %arg3[%c0_5, %c0_6] : memref<1x128xbf16, #tpu.memory_space<vmem>>, vector<1x128xbf16>
    %21 = arith.extf %20 : vector<1x128xbf16> to vector<1x128xf32>
    %22 = vector.broadcast %21 : vector<1x128xf32> to vector<16x128xf32>
    %23 = arith.mulf %19, %22 : vector<16x128xf32>
    %c0_7 = arith.constant 0 : index
    %c0_8 = arith.constant 0 : index
    %24 = vector.load %arg4[%c0_7, %c0_8] : memref<1x128xbf16, #tpu.memory_space<vmem>>, vector<1x128xbf16>
    %25 = arith.extf %24 : vector<1x128xbf16> to vector<1x128xf32>
    %26 = vector.broadcast %25 : vector<1x128xf32> to vector<16x128xf32>
    %27 = arith.addf %23, %26 : vector<16x128xf32>
    %28 = arith.truncf %27 : vector<16x128xf32> to vector<16x128xbf16>
    %c0_9 = arith.constant 0 : index
    %c0_10 = arith.constant 0 : index
    %29 = vector.load %arg5[%c0_9, %c0_10] : memref<128x384xbf16, #tpu.memory_space<vmem>>, vector<128x384xbf16>
    %cst_11 = arith.constant dense<0.000000e+00> : vector<16x384xf32>
    %30 = tpu.matmul %28, %29, %cst_11 {dimension_numbers = #tpu.dot_dimension_numbers<[1], [0], [0], [1], [0, 0, 1, 1], [], []>} : vector<16x128xbf16>, vector<128x384xbf16>, vector<16x384xf32> -> vector<16x384xf32>
    %c0_12 = arith.constant 0 : index
    %c0_13 = arith.constant 0 : index
    %31 = vector.load %arg6[%c0_12, %c0_13] : memref<1x384xbf16, #tpu.memory_space<vmem>>, vector<1x384xbf16>
    %32 = arith.extf %31 : vector<1x384xbf16> to vector<1x384xf32>
    %33 = vector.broadcast %32 : vector<1x384xf32> to vector<16x384xf32>
    %34 = arith.addf %30, %33 : vector<16x384xf32>
    %35 = arith.truncf %34 : vector<16x384xf32> to vector<16x384xbf16>
    %c0_14 = arith.constant 0 : index
    %c0_15 = arith.constant 0 : index
    %36 = vector.load %arg7[%c0_14, %c0_15] : memref<16x384xbf16, #tpu.memory_space<vmem>>, vector<16x384xbf16>
    tpu.vector_store %arg7[%c0_14, %c0_15], %35 {strides = array<i32>} : memref<16x384xbf16, #tpu.memory_space<vmem>>, vector<16x384xbf16>,
    return
  }
  func.func @transform_0(%arg0: i32, %arg1: i32) -> (i32, i32) {
    %c0_i32 = arith.constant 0 : i32
    %c0_i32_0 = arith.constant 0 : i32
    return %arg0, %c0_i32 : i32, i32
  }
  func.func @transform_1(%arg0: i32, %arg1: i32) -> (i32, i32) {
    %c0_i32 = arith.constant 0 : i32
    %c0_i32_0 = arith.constant 0 : i32
    %c0_i32_1 = arith.constant 0 : i32
    return %c0_i32, %c0_i32_0 : i32, i32
  }
  func.func @transform_2(%arg0: i32, %arg1: i32) -> (i32, i32) {
    %c0_i32 = arith.constant 0 : i32
    %c0_i32_0 = arith.constant 0 : i32
    %c0_i32_1 = arith.constant 0 : i32
    return %c0_i32, %c0_i32_0 : i32, i32
  }
  func.func @transform_3(%arg0: i32, %arg1: i32) -> (i32, i32) {
    %c0_i32 = arith.constant 0 : i32
    %c0_i32_0 = arith.constant 0 : i32
    return %c0_i32, %arg1 : i32, i32
  }
  func.func @transform_4(%arg0: i32, %arg1: i32) -> (i32, i32) {
    %c0_i32 = arith.constant 0 : i32
    %c0_i32_0 = arith.constant 0 : i32
    return %c0_i32, %arg1 : i32, i32
  }
  func.func @transform_5(%arg0: i32, %arg1: i32) -> (i32, i32) {
    %c0_i32 = arith.constant 0 : i32
    return %arg0, %arg1 : i32, i32
  }
}

module attributes {stable_mosaic.version = 11 : i64} {
  func.func @_attn_group_kernel(%arg0: i32, %arg1: i32, %arg2: memref<1x8x128xbf16, #tpu.memory_space<vmem>>, %arg3: memref<1x8x128xbf16, #tpu.memory_space<vmem>>, %arg4: memref<1x8x128xbf16, #tpu.memory_space<vmem>>, %arg5: memref<1x8x128xbf16, #tpu.memory_space<vmem>>) attributes {dimension_semantics = [#tpu.dimension_semantics<parallel>, #tpu.dimension_semantics<parallel>], iteration_bounds = array<i64: 2, 1>, scalar_prefetch = 0 : i64, scratch_operands = 0 : i64, tpu.core_type = #tpu.core_type<tc>, window_params = [{transform_indices = @transform_0, window_bounds = array<i64: 1, 8, 128>}, {transform_indices = @transform_1, window_bounds = array<i64: 1, 8, 128>}, {transform_indices = @transform_2, window_bounds = array<i64: 1, 8, 128>}, {transform_indices = @transform_3, window_bounds = array<i64: 1, 8, 128>}]} {
    %0 = tpu.iota {dimensions = array<i32: 1>} : vector<1x8xi32>
    %c7_i32 = arith.constant 7 : i32
    %1 = vector.broadcast %c7_i32 : i32 to vector<1x8xi32>
    %2 = arith.cmpi slt, %0, %1 : vector<1x8xi32>
    %c0 = arith.constant 0 : index
    %c0_0 = arith.constant 0 : index
    %c0_1 = arith.constant 0 : index
    %3 = vector.load %arg2[%c0, %c0_0, %c0_1] : memref<1x8x128xbf16, #tpu.memory_space<vmem>>, vector<1x8x64xbf16>
    %4 = vector.shape_cast %3 : vector<1x8x64xbf16> to vector<8x64xbf16>
    %c0_2 = arith.constant 0 : index
    %c0_3 = arith.constant 0 : index
    %c0_4 = arith.constant 0 : index
    %5 = vector.load %arg3[%c0_2, %c0_3, %c0_4] : memref<1x8x128xbf16, #tpu.memory_space<vmem>>, vector<1x8x64xbf16>
    %6 = vector.shape_cast %5 : vector<1x8x64xbf16> to vector<8x64xbf16>
    %c0_5 = arith.constant 0 : index
    %c0_6 = arith.constant 0 : index
    %c0_7 = arith.constant 0 : index
    %7 = vector.load %arg4[%c0_5, %c0_6, %c0_7] : memref<1x8x128xbf16, #tpu.memory_space<vmem>>, vector<1x8x64xbf16>
    %8 = vector.shape_cast %7 : vector<1x8x64xbf16> to vector<8x64xbf16>
    %cst = arith.constant dense<0.000000e+00> : vector<8x8xf32>
    %9 = tpu.matmul %4, %6, %cst {dimension_numbers = #tpu.dot_dimension_numbers<[1], [1], [0], [0], [0, 0, 1, 0], [], []>} : vector<8x64xbf16>, vector<8x64xbf16>, vector<8x8xf32> -> vector<8x8xf32>
    %cst_8 = arith.constant 1.250000e-01 : f32
    %10 = vector.broadcast %cst_8 : f32 to vector<8x8xf32>
    %11 = arith.mulf %9, %10 : vector<8x8xf32>
    %cst_9 = arith.constant -1.000000e+30 : f32
    %12 = vector.shape_cast %2 : vector<1x8xi1> to vector<1x8xi1>
    %13 = vector.broadcast %12 : vector<1x8xi1> to vector<8x8xi1>
    %14 = vector.broadcast %cst_9 : f32 to vector<8x8xf32>
    %15 = arith.select %13, %11, %14 : vector<8x8xi1>, vector<8x8xf32>
    %cst_10 = arith.constant dense<0xFF800000> : vector<8xf32>
    %16 = vector.multi_reduction <maximumf>, %15, %cst_10 [1] : vector<8x8xf32> to vector<8xf32>
    %17 = vector.shape_cast %16 : vector<8xf32> to vector<8x1xf32>
    %18 = vector.broadcast %17 : vector<8x1xf32> to vector<8x8xf32>
    %19 = arith.subf %15, %18 : vector<8x8xf32>
    %20 = math.exp %19 : vector<8x8xf32>
    %cst_11 = arith.constant dense<0.000000e+00> : vector<8xf32>
    %21 = vector.multi_reduction <add>, %20, %cst_11 [1] : vector<8x8xf32> to vector<8xf32>
    %22 = vector.shape_cast %21 : vector<8xf32> to vector<8x1xf32>
    %23 = arith.truncf %20 : vector<8x8xf32> to vector<8x8xbf16>
    %cst_12 = arith.constant dense<0.000000e+00> : vector<8x64xf32>
    %24 = tpu.matmul %23, %8, %cst_12 {dimension_numbers = #tpu.dot_dimension_numbers<[1], [0], [0], [1], [0, 0, 1, 1], [], []>} : vector<8x8xbf16>, vector<8x64xbf16>, vector<8x64xf32> -> vector<8x64xf32>
    %25 = tpu.reciprocal %22 {approx = true} : vector<8x1xf32> -> vector<8x1xf32>
    %26 = vector.broadcast %25 : vector<8x1xf32> to vector<8x64xf32>
    %27 = arith.mulf %24, %26 : vector<8x64xf32>
    %28 = arith.truncf %27 : vector<8x64xf32> to vector<8x64xbf16>
    %c0_13 = arith.constant 0 : index
    %c0_14 = arith.constant 0 : index
    %c0_15 = arith.constant 0 : index
    %29 = vector.load %arg5[%c0_13, %c0_14, %c0_15] : memref<1x8x128xbf16, #tpu.memory_space<vmem>>, vector<1x8x64xbf16>
    %30 = vector.shape_cast %29 : vector<1x8x64xbf16> to vector<8x64xbf16>
    %31 = vector.shape_cast %28 : vector<8x64xbf16> to vector<1x8x64xbf16>
    tpu.vector_store %arg5[%c0_13, %c0_14, %c0_15], %31 {strides = array<i32>} : memref<1x8x128xbf16, #tpu.memory_space<vmem>>, vector<1x8x64xbf16>,
    %c0_16 = arith.constant 0 : index
    %c0_17 = arith.constant 0 : index
    %c64 = arith.constant 64 : index
    %32 = vector.load %arg2[%c0_16, %c0_17, %c64] : memref<1x8x128xbf16, #tpu.memory_space<vmem>>, vector<1x8x64xbf16>
    %33 = vector.shape_cast %32 : vector<1x8x64xbf16> to vector<8x64xbf16>
    %c0_18 = arith.constant 0 : index
    %c0_19 = arith.constant 0 : index
    %c64_20 = arith.constant 64 : index
    %34 = vector.load %arg3[%c0_18, %c0_19, %c64_20] : memref<1x8x128xbf16, #tpu.memory_space<vmem>>, vector<1x8x64xbf16>
    %35 = vector.shape_cast %34 : vector<1x8x64xbf16> to vector<8x64xbf16>
    %c0_21 = arith.constant 0 : index
    %c0_22 = arith.constant 0 : index
    %c64_23 = arith.constant 64 : index
    %36 = vector.load %arg4[%c0_21, %c0_22, %c64_23] : memref<1x8x128xbf16, #tpu.memory_space<vmem>>, vector<1x8x64xbf16>
    %37 = vector.shape_cast %36 : vector<1x8x64xbf16> to vector<8x64xbf16>
    %cst_24 = arith.constant dense<0.000000e+00> : vector<8x8xf32>
    %38 = tpu.matmul %33, %35, %cst_24 {dimension_numbers = #tpu.dot_dimension_numbers<[1], [1], [0], [0], [0, 0, 1, 0], [], []>} : vector<8x64xbf16>, vector<8x64xbf16>, vector<8x8xf32> -> vector<8x8xf32>
    %cst_25 = arith.constant 1.250000e-01 : f32
    %39 = vector.broadcast %cst_25 : f32 to vector<8x8xf32>
    %40 = arith.mulf %38, %39 : vector<8x8xf32>
    %cst_26 = arith.constant -1.000000e+30 : f32
    %41 = vector.shape_cast %2 : vector<1x8xi1> to vector<1x8xi1>
    %42 = vector.broadcast %41 : vector<1x8xi1> to vector<8x8xi1>
    %43 = vector.broadcast %cst_26 : f32 to vector<8x8xf32>
    %44 = arith.select %42, %40, %43 : vector<8x8xi1>, vector<8x8xf32>
    %cst_27 = arith.constant dense<0xFF800000> : vector<8xf32>
    %45 = vector.multi_reduction <maximumf>, %44, %cst_27 [1] : vector<8x8xf32> to vector<8xf32>
    %46 = vector.shape_cast %45 : vector<8xf32> to vector<8x1xf32>
    %47 = vector.broadcast %46 : vector<8x1xf32> to vector<8x8xf32>
    %48 = arith.subf %44, %47 : vector<8x8xf32>
    %49 = math.exp %48 : vector<8x8xf32>
    %cst_28 = arith.constant dense<0.000000e+00> : vector<8xf32>
    %50 = vector.multi_reduction <add>, %49, %cst_28 [1] : vector<8x8xf32> to vector<8xf32>
    %51 = vector.shape_cast %50 : vector<8xf32> to vector<8x1xf32>
    %52 = arith.truncf %49 : vector<8x8xf32> to vector<8x8xbf16>
    %cst_29 = arith.constant dense<0.000000e+00> : vector<8x64xf32>
    %53 = tpu.matmul %52, %37, %cst_29 {dimension_numbers = #tpu.dot_dimension_numbers<[1], [0], [0], [1], [0, 0, 1, 1], [], []>} : vector<8x8xbf16>, vector<8x64xbf16>, vector<8x64xf32> -> vector<8x64xf32>
    %54 = tpu.reciprocal %51 {approx = true} : vector<8x1xf32> -> vector<8x1xf32>
    %55 = vector.broadcast %54 : vector<8x1xf32> to vector<8x64xf32>
    %56 = arith.mulf %53, %55 : vector<8x64xf32>
    %57 = arith.truncf %56 : vector<8x64xf32> to vector<8x64xbf16>
    %c0_30 = arith.constant 0 : index
    %c0_31 = arith.constant 0 : index
    %c64_32 = arith.constant 64 : index
    %58 = vector.load %arg5[%c0_30, %c0_31, %c64_32] : memref<1x8x128xbf16, #tpu.memory_space<vmem>>, vector<1x8x64xbf16>
    %59 = vector.shape_cast %58 : vector<1x8x64xbf16> to vector<8x64xbf16>
    %60 = vector.shape_cast %57 : vector<8x64xbf16> to vector<1x8x64xbf16>
    tpu.vector_store %arg5[%c0_30, %c0_31, %c64_32], %60 {strides = array<i32>} : memref<1x8x128xbf16, #tpu.memory_space<vmem>>, vector<1x8x64xbf16>,
    return
  }
  func.func @transform_0(%arg0: i32, %arg1: i32) -> (i32, i32, i32) {
    %c0_i32 = arith.constant 0 : i32
    %c0_i32_0 = arith.constant 0 : i32
    return %arg0, %c0_i32, %arg1 : i32, i32, i32
  }
  func.func @transform_1(%arg0: i32, %arg1: i32) -> (i32, i32, i32) {
    %c1_i32 = arith.constant 1 : i32
    %0 = arith.addi %arg1, %c1_i32 : i32
    %c0_i32 = arith.constant 0 : i32
    %c0_i32_0 = arith.constant 0 : i32
    return %arg0, %c0_i32, %0 : i32, i32, i32
  }
  func.func @transform_2(%arg0: i32, %arg1: i32) -> (i32, i32, i32) {
    %c2_i32 = arith.constant 2 : i32
    %0 = arith.addi %arg1, %c2_i32 : i32
    %c0_i32 = arith.constant 0 : i32
    %c0_i32_0 = arith.constant 0 : i32
    return %arg0, %c0_i32, %0 : i32, i32, i32
  }
  func.func @transform_3(%arg0: i32, %arg1: i32) -> (i32, i32, i32) {
    %c0_i32 = arith.constant 0 : i32
    %c0_i32_0 = arith.constant 0 : i32
    return %arg0, %c0_i32, %arg1 : i32, i32, i32
  }
}

module attributes {stable_mosaic.version = 11 : i64} {
  func.func @_mm_res_kernel(%arg0: i32, %arg1: i32, %arg2: i32, %arg3: memref<16x128xbf16, #tpu.memory_space<vmem>>, %arg4: memref<128x128xbf16, #tpu.memory_space<vmem>>, %arg5: memref<1x128xbf16, #tpu.memory_space<vmem>>, %arg6: memref<16x128xbf16, #tpu.memory_space<vmem>>, %arg7: memref<16x128xbf16, #tpu.memory_space<vmem>>, %arg8: memref<16x128xf32, #tpu.memory_space<vmem>>) attributes {dimension_semantics = [#tpu.dimension_semantics<parallel>, #tpu.dimension_semantics<parallel>, #tpu.dimension_semantics<arbitrary>], iteration_bounds = array<i64: 1, 1, 1>, scalar_prefetch = 0 : i64, scratch_operands = 1 : i64, tpu.core_type = #tpu.core_type<tc>, window_params = [{transform_indices = @transform_0, window_bounds = array<i64: 16, 128>}, {transform_indices = @transform_1, window_bounds = array<i64: 128, 128>}, {transform_indices = @transform_2, window_bounds = array<i64: 1, 128>}, {transform_indices = @transform_3, window_bounds = array<i64: 16, 128>}, {transform_indices = @transform_4, window_bounds = array<i64: 16, 128>}]} {
    %c0_i32 = arith.constant 0 : i32
    %0 = arith.cmpi eq, %arg2, %c0_i32 : i32
    %1 = arith.extui %0 : i1 to i32
    %c0_i32_0 = arith.constant 0 : i32
    %2 = arith.cmpi ne, %1, %c0_i32_0 : i32
    scf.if %2 {
      %cst_10 = arith.constant 0.000000e+00 : f32
      %12 = vector.broadcast %cst_10 : f32 to vector<16x128xf32>
      %c0_11 = arith.constant 0 : index
      %c0_12 = arith.constant 0 : index
      %13 = vector.load %arg8[%c0_11, %c0_12] : memref<16x128xf32, #tpu.memory_space<vmem>>, vector<16x128xf32>
      tpu.vector_store %arg8[%c0_11, %c0_12], %12 {strides = array<i32>} : memref<16x128xf32, #tpu.memory_space<vmem>>, vector<16x128xf32>,
    } else {
    }
    %c0 = arith.constant 0 : index
    %c0_1 = arith.constant 0 : index
    %3 = vector.load %arg8[%c0, %c0_1] : memref<16x128xf32, #tpu.memory_space<vmem>>, vector<16x128xf32>
    %c0_2 = arith.constant 0 : index
    %c0_3 = arith.constant 0 : index
    %4 = vector.load %arg3[%c0_2, %c0_3] : memref<16x128xbf16, #tpu.memory_space<vmem>>, vector<16x128xbf16>
    %c0_4 = arith.constant 0 : index
    %c0_5 = arith.constant 0 : index
    %5 = vector.load %arg4[%c0_4, %c0_5] : memref<128x128xbf16, #tpu.memory_space<vmem>>, vector<128x128xbf16>
    %cst = arith.constant dense<0.000000e+00> : vector<16x128xf32>
    %6 = tpu.matmul %4, %5, %cst {dimension_numbers = #tpu.dot_dimension_numbers<[1], [0], [0], [1], [0, 0, 1, 1], [], []>} : vector<16x128xbf16>, vector<128x128xbf16>, vector<16x128xf32> -> vector<16x128xf32>
    %7 = arith.addf %3, %6 : vector<16x128xf32>
    %c0_6 = arith.constant 0 : index
    %c0_7 = arith.constant 0 : index
    %8 = vector.load %arg8[%c0_6, %c0_7] : memref<16x128xf32, #tpu.memory_space<vmem>>, vector<16x128xf32>
    tpu.vector_store %arg8[%c0_6, %c0_7], %7 {strides = array<i32>} : memref<16x128xf32, #tpu.memory_space<vmem>>, vector<16x128xf32>,
    %c0_i32_8 = arith.constant 0 : i32
    %9 = arith.cmpi eq, %arg2, %c0_i32_8 : i32
    %10 = arith.extui %9 : i1 to i32
    %c0_i32_9 = arith.constant 0 : i32
    %11 = arith.cmpi ne, %10, %c0_i32_9 : i32
    scf.if %11 {
      %c0_10 = arith.constant 0 : index
      %c0_11 = arith.constant 0 : index
      %12 = vector.load %arg8[%c0_10, %c0_11] : memref<16x128xf32, #tpu.memory_space<vmem>>, vector<16x128xf32>
      %c0_12 = arith.constant 0 : index
      %c0_13 = arith.constant 0 : index
      %13 = vector.load %arg5[%c0_12, %c0_13] : memref<1x128xbf16, #tpu.memory_space<vmem>>, vector<1x128xbf16>
      %14 = arith.extf %13 : vector<1x128xbf16> to vector<1x128xf32>
      %15 = vector.broadcast %14 : vector<1x128xf32> to vector<16x128xf32>
      %16 = arith.addf %12, %15 : vector<16x128xf32>
      %c0_14 = arith.constant 0 : index
      %c0_15 = arith.constant 0 : index
      %17 = vector.load %arg6[%c0_14, %c0_15] : memref<16x128xbf16, #tpu.memory_space<vmem>>, vector<16x128xbf16>
      %18 = arith.extf %17 : vector<16x128xbf16> to vector<16x128xf32>
      %19 = arith.addf %16, %18 : vector<16x128xf32>
      %20 = arith.truncf %19 : vector<16x128xf32> to vector<16x128xbf16>
      %c0_16 = arith.constant 0 : index
      %c0_17 = arith.constant 0 : index
      %21 = vector.load %arg7[%c0_16, %c0_17] : memref<16x128xbf16, #tpu.memory_space<vmem>>, vector<16x128xbf16>
      tpu.vector_store %arg7[%c0_16, %c0_17], %20 {strides = array<i32>} : memref<16x128xbf16, #tpu.memory_space<vmem>>, vector<16x128xbf16>,
    } else {
    }
    return
  }
  func.func @transform_0(%arg0: i32, %arg1: i32, %arg2: i32) -> (i32, i32) {
    %c0_i32 = arith.constant 0 : i32
    return %arg0, %arg2 : i32, i32
  }
  func.func @transform_1(%arg0: i32, %arg1: i32, %arg2: i32) -> (i32, i32) {
    %c0_i32 = arith.constant 0 : i32
    return %arg2, %arg1 : i32, i32
  }
  func.func @transform_2(%arg0: i32, %arg1: i32, %arg2: i32) -> (i32, i32) {
    %c0_i32 = arith.constant 0 : i32
    %c0_i32_0 = arith.constant 0 : i32
    return %c0_i32, %arg1 : i32, i32
  }
  func.func @transform_3(%arg0: i32, %arg1: i32, %arg2: i32) -> (i32, i32) {
    %c0_i32 = arith.constant 0 : i32
    return %arg0, %arg1 : i32, i32
  }
  func.func @transform_4(%arg0: i32, %arg1: i32, %arg2: i32) -> (i32, i32) {
    %c0_i32 = arith.constant 0 : i32
    return %arg0, %arg1 : i32, i32
  }
}

module attributes {stable_mosaic.version = 11 : i64} {
  func.func @_mm_res_kernel(%arg0: i32, %arg1: i32, %arg2: i32, %arg3: memref<16x512xbf16, #tpu.memory_space<vmem>>, %arg4: memref<512x128xbf16, #tpu.memory_space<vmem>>, %arg5: memref<1x128xbf16, #tpu.memory_space<vmem>>, %arg6: memref<16x128xbf16, #tpu.memory_space<vmem>>, %arg7: memref<16x128xbf16, #tpu.memory_space<vmem>>, %arg8: memref<16x128xf32, #tpu.memory_space<vmem>>) attributes {dimension_semantics = [#tpu.dimension_semantics<parallel>, #tpu.dimension_semantics<parallel>, #tpu.dimension_semantics<arbitrary>], iteration_bounds = array<i64: 1, 1, 1>, scalar_prefetch = 0 : i64, scratch_operands = 1 : i64, tpu.core_type = #tpu.core_type<tc>, window_params = [{transform_indices = @transform_0, window_bounds = array<i64: 16, 512>}, {transform_indices = @transform_1, window_bounds = array<i64: 512, 128>}, {transform_indices = @transform_2, window_bounds = array<i64: 1, 128>}, {transform_indices = @transform_3, window_bounds = array<i64: 16, 128>}, {transform_indices = @transform_4, window_bounds = array<i64: 16, 128>}]} {
    %c0_i32 = arith.constant 0 : i32
    %0 = arith.cmpi eq, %arg2, %c0_i32 : i32
    %1 = arith.extui %0 : i1 to i32
    %c0_i32_0 = arith.constant 0 : i32
    %2 = arith.cmpi ne, %1, %c0_i32_0 : i32
    scf.if %2 {
      %cst_10 = arith.constant 0.000000e+00 : f32
      %12 = vector.broadcast %cst_10 : f32 to vector<16x128xf32>
      %c0_11 = arith.constant 0 : index
      %c0_12 = arith.constant 0 : index
      %13 = vector.load %arg8[%c0_11, %c0_12] : memref<16x128xf32, #tpu.memory_space<vmem>>, vector<16x128xf32>
      tpu.vector_store %arg8[%c0_11, %c0_12], %12 {strides = array<i32>} : memref<16x128xf32, #tpu.memory_space<vmem>>, vector<16x128xf32>,
    } else {
    }
    %c0 = arith.constant 0 : index
    %c0_1 = arith.constant 0 : index
    %3 = vector.load %arg8[%c0, %c0_1] : memref<16x128xf32, #tpu.memory_space<vmem>>, vector<16x128xf32>
    %c0_2 = arith.constant 0 : index
    %c0_3 = arith.constant 0 : index
    %4 = vector.load %arg3[%c0_2, %c0_3] : memref<16x512xbf16, #tpu.memory_space<vmem>>, vector<16x512xbf16>
    %c0_4 = arith.constant 0 : index
    %c0_5 = arith.constant 0 : index
    %5 = vector.load %arg4[%c0_4, %c0_5] : memref<512x128xbf16, #tpu.memory_space<vmem>>, vector<512x128xbf16>
    %cst = arith.constant dense<0.000000e+00> : vector<16x128xf32>
    %6 = tpu.matmul %4, %5, %cst {dimension_numbers = #tpu.dot_dimension_numbers<[1], [0], [0], [1], [0, 0, 1, 1], [], []>} : vector<16x512xbf16>, vector<512x128xbf16>, vector<16x128xf32> -> vector<16x128xf32>
    %7 = arith.addf %3, %6 : vector<16x128xf32>
    %c0_6 = arith.constant 0 : index
    %c0_7 = arith.constant 0 : index
    %8 = vector.load %arg8[%c0_6, %c0_7] : memref<16x128xf32, #tpu.memory_space<vmem>>, vector<16x128xf32>
    tpu.vector_store %arg8[%c0_6, %c0_7], %7 {strides = array<i32>} : memref<16x128xf32, #tpu.memory_space<vmem>>, vector<16x128xf32>,
    %c0_i32_8 = arith.constant 0 : i32
    %9 = arith.cmpi eq, %arg2, %c0_i32_8 : i32
    %10 = arith.extui %9 : i1 to i32
    %c0_i32_9 = arith.constant 0 : i32
    %11 = arith.cmpi ne, %10, %c0_i32_9 : i32
    scf.if %11 {
      %c0_10 = arith.constant 0 : index
      %c0_11 = arith.constant 0 : index
      %12 = vector.load %arg8[%c0_10, %c0_11] : memref<16x128xf32, #tpu.memory_space<vmem>>, vector<16x128xf32>
      %c0_12 = arith.constant 0 : index
      %c0_13 = arith.constant 0 : index
      %13 = vector.load %arg5[%c0_12, %c0_13] : memref<1x128xbf16, #tpu.memory_space<vmem>>, vector<1x128xbf16>
      %14 = arith.extf %13 : vector<1x128xbf16> to vector<1x128xf32>
      %15 = vector.broadcast %14 : vector<1x128xf32> to vector<16x128xf32>
      %16 = arith.addf %12, %15 : vector<16x128xf32>
      %c0_14 = arith.constant 0 : index
      %c0_15 = arith.constant 0 : index
      %17 = vector.load %arg6[%c0_14, %c0_15] : memref<16x128xbf16, #tpu.memory_space<vmem>>, vector<16x128xbf16>
      %18 = arith.extf %17 : vector<16x128xbf16> to vector<16x128xf32>
      %19 = arith.addf %16, %18 : vector<16x128xf32>
      %20 = arith.truncf %19 : vector<16x128xf32> to vector<16x128xbf16>
      %c0_16 = arith.constant 0 : index
      %c0_17 = arith.constant 0 : index
      %21 = vector.load %arg7[%c0_16, %c0_17] : memref<16x128xbf16, #tpu.memory_space<vmem>>, vector<16x128xbf16>
      tpu.vector_store %arg7[%c0_16, %c0_17], %20 {strides = array<i32>} : memref<16x128xbf16, #tpu.memory_space<vmem>>, vector<16x128xbf16>,
    } else {
    }
    return
  }
  func.func @transform_0(%arg0: i32, %arg1: i32, %arg2: i32) -> (i32, i32) {
    %c0_i32 = arith.constant 0 : i32
    return %arg0, %arg2 : i32, i32
  }
  func.func @transform_1(%arg0: i32, %arg1: i32, %arg2: i32) -> (i32, i32) {
    %c0_i32 = arith.constant 0 : i32
    return %arg2, %arg1 : i32, i32
  }
  func.func @transform_2(%arg0: i32, %arg1: i32, %arg2: i32) -> (i32, i32) {
    %c0_i32 = arith.constant 0 : i32
    %c0_i32_0 = arith.constant 0 : i32
    return %c0_i32, %arg1 : i32, i32
  }
  func.func @transform_3(%arg0: i32, %arg1: i32, %arg2: i32) -> (i32, i32) {
    %c0_i32 = arith.constant 0 : i32
    return %arg0, %arg1 : i32, i32
  }
  func.func @transform_4(%arg0: i32, %arg1: i32, %arg2: i32) -> (i32, i32) {
    %c0_i32 = arith.constant 0 : i32
    return %arg0, %arg1 : i32, i32
  }
}

module attributes {stable_mosaic.version = 11 : i64} {
  func.func @_ln_mm_kernel(%arg0: i32, %arg1: i32, %arg2: memref<16x128xbf16, #tpu.memory_space<vmem>>, %arg3: memref<1x128xbf16, #tpu.memory_space<vmem>>, %arg4: memref<1x128xbf16, #tpu.memory_space<vmem>>, %arg5: memref<128x512xbf16, #tpu.memory_space<vmem>>, %arg6: memref<1x512xbf16, #tpu.memory_space<vmem>>, %arg7: memref<16x512xbf16, #tpu.memory_space<vmem>>) attributes {dimension_semantics = [#tpu.dimension_semantics<parallel>, #tpu.dimension_semantics<parallel>], iteration_bounds = array<i64: 1, 1>, scalar_prefetch = 0 : i64, scratch_operands = 0 : i64, tpu.core_type = #tpu.core_type<tc>, window_params = [{transform_indices = @transform_0, window_bounds = array<i64: 16, 128>}, {pipeline_mode = #tpu.pipeline_mode<synchronous>, transform_indices = @transform_1, window_bounds = array<i64: 1, 128>}, {pipeline_mode = #tpu.pipeline_mode<synchronous>, transform_indices = @transform_2, window_bounds = array<i64: 1, 128>}, {transform_indices = @transform_3, window_bounds = array<i64: 128, 512>}, {transform_indices = @transform_4, window_bounds = array<i64: 1, 512>}, {transform_indices = @transform_5, window_bounds = array<i64: 16, 512>}]} {
    %c0 = arith.constant 0 : index
    %c0_0 = arith.constant 0 : index
    %0 = vector.load %arg2[%c0, %c0_0] : memref<16x128xbf16, #tpu.memory_space<vmem>>, vector<16x128xbf16>
    %1 = arith.extf %0 : vector<16x128xbf16> to vector<16x128xf32>
    %cst = arith.constant dense<0.000000e+00> : vector<16xf32>
    %2 = vector.multi_reduction <add>, %1, %cst [1] : vector<16x128xf32> to vector<16xf32>
    %3 = vector.shape_cast %2 : vector<16xf32> to vector<16x1xf32>
    %cst_1 = arith.constant 1.280000e+02 : f32
    %4 = vector.broadcast %cst_1 : f32 to vector<16x1xf32>
    %5 = arith.divf %3, %4 : vector<16x1xf32>
    %6 = vector.broadcast %5 : vector<16x1xf32> to vector<16x128xf32>
    %7 = arith.subf %1, %6 : vector<16x128xf32>
    %8 = arith.mulf %7, %7 : vector<16x128xf32>
    %cst_2 = arith.constant dense<0.000000e+00> : vector<16xf32>
    %9 = vector.multi_reduction <add>, %8, %cst_2 [1] : vector<16x128xf32> to vector<16xf32>
    %10 = vector.shape_cast %9 : vector<16xf32> to vector<16x1xf32>
    %cst_3 = arith.constant 1.280000e+02 : f32
    %11 = vector.broadcast %cst_3 : f32 to vector<16x1xf32>
    %12 = arith.divf %10, %11 : vector<16x1xf32>
    %13 = vector.broadcast %5 : vector<16x1xf32> to vector<16x128xf32>
    %14 = arith.subf %1, %13 : vector<16x128xf32>
    %cst_4 = arith.constant 9.99999974E-6 : f32
    %15 = vector.broadcast %cst_4 : f32 to vector<16x1xf32>
    %16 = arith.addf %12, %15 : vector<16x1xf32>
    %17 = math.rsqrt %16 : vector<16x1xf32>
    %18 = vector.broadcast %17 : vector<16x1xf32> to vector<16x128xf32>
    %19 = arith.mulf %14, %18 : vector<16x128xf32>
    %c0_5 = arith.constant 0 : index
    %c0_6 = arith.constant 0 : index
    %20 = vector.load %arg3[%c0_5, %c0_6] : memref<1x128xbf16, #tpu.memory_space<vmem>>, vector<1x128xbf16>
    %21 = arith.extf %20 : vector<1x128xbf16> to vector<1x128xf32>
    %22 = vector.broadcast %21 : vector<1x128xf32> to vector<16x128xf32>
    %23 = arith.mulf %19, %22 : vector<16x128xf32>
    %c0_7 = arith.constant 0 : index
    %c0_8 = arith.constant 0 : index
    %24 = vector.load %arg4[%c0_7, %c0_8] : memref<1x128xbf16, #tpu.memory_space<vmem>>, vector<1x128xbf16>
    %25 = arith.extf %24 : vector<1x128xbf16> to vector<1x128xf32>
    %26 = vector.broadcast %25 : vector<1x128xf32> to vector<16x128xf32>
    %27 = arith.addf %23, %26 : vector<16x128xf32>
    %28 = arith.truncf %27 : vector<16x128xf32> to vector<16x128xbf16>
    %c0_9 = arith.constant 0 : index
    %c0_10 = arith.constant 0 : index
    %29 = vector.load %arg5[%c0_9, %c0_10] : memref<128x512xbf16, #tpu.memory_space<vmem>>, vector<128x512xbf16>
    %cst_11 = arith.constant dense<0.000000e+00> : vector<16x512xf32>
    %30 = tpu.matmul %28, %29, %cst_11 {dimension_numbers = #tpu.dot_dimension_numbers<[1], [0], [0], [1], [0, 0, 1, 1], [], []>} : vector<16x128xbf16>, vector<128x512xbf16>, vector<16x512xf32> -> vector<16x512xf32>
    %c0_12 = arith.constant 0 : index
    %c0_13 = arith.constant 0 : index
    %31 = vector.load %arg6[%c0_12, %c0_13] : memref<1x512xbf16, #tpu.memory_space<vmem>>, vector<1x512xbf16>
    %32 = arith.extf %31 : vector<1x512xbf16> to vector<1x512xf32>
    %33 = vector.broadcast %32 : vector<1x512xf32> to vector<16x512xf32>
    %34 = arith.addf %30, %33 : vector<16x512xf32>
    %cst_14 = arith.constant 1.702000e+00 : f32
    %35 = vector.broadcast %cst_14 : f32 to vector<16x512xf32>
    %36 = arith.mulf %35, %34 : vector<16x512xf32>
    %37 = arith.negf %36 : vector<16x512xf32>
    %38 = math.exp %37 : vector<16x512xf32>
    %cst_15 = arith.constant 1.000000e+00 : f32
    %39 = vector.broadcast %cst_15 : f32 to vector<16x512xf32>
    %40 = arith.addf %39, %38 : vector<16x512xf32>
    %41 = arith.divf %39, %40 : vector<16x512xf32>
    %42 = arith.mulf %34, %41 : vector<16x512xf32>
    %43 = arith.truncf %42 : vector<16x512xf32> to vector<16x512xbf16>
    %c0_16 = arith.constant 0 : index
    %c0_17 = arith.constant 0 : index
    %44 = vector.load %arg7[%c0_16, %c0_17] : memref<16x512xbf16, #tpu.memory_space<vmem>>, vector<16x512xbf16>
    tpu.vector_store %arg7[%c0_16, %c0_17], %43 {strides = array<i32>} : memref<16x512xbf16, #tpu.memory_space<vmem>>, vector<16x512xbf16>,
    return
  }
  func.func @transform_0(%arg0: i32, %arg1: i32) -> (i32, i32) {
    %c0_i32 = arith.constant 0 : i32
    %c0_i32_0 = arith.constant 0 : i32
    return %arg0, %c0_i32 : i32, i32
  }
  func.func @transform_1(%arg0: i32, %arg1: i32) -> (i32, i32) {
    %c0_i32 = arith.constant 0 : i32
    %c0_i32_0 = arith.constant 0 : i32
    %c0_i32_1 = arith.constant 0 : i32
    return %c0_i32, %c0_i32_0 : i32, i32
  }
  func.func @transform_2(%arg0: i32, %arg1: i32) -> (i32, i32) {
    %c0_i32 = arith.constant 0 : i32
    %c0_i32_0 = arith.constant 0 : i32
    %c0_i32_1 = arith.constant 0 : i32
    return %c0_i32, %c0_i32_0 : i32, i32
  }
  func.func @transform_3(%arg0: i32, %arg1: i32) -> (i32, i32) {
    %c0_i32 = arith.constant 0 : i32
    %c0_i32_0 = arith.constant 0 : i32
    return %c0_i32, %arg1 : i32, i32
  }
  func.func @transform_4(%arg0: i32, %arg1: i32) -> (i32, i32) {
    %c0_i32 = arith.constant 0 : i32
    %c0_i32_0 = arith.constant 0 : i32
    return %c0_i32, %arg1 : i32, i32
  }
  func.func @transform_5(%arg0: i32, %arg1: i32) -> (i32, i32) {
    %c0_i32 = arith.constant 0 : i32
    return %arg0, %arg1 : i32, i32
  }
}

module attributes {stable_mosaic.version = 11 : i64} {
  func.func @_ln_mm_kernel(%arg0: i32, %arg1: i32, %arg2: memref<8x128xbf16, #tpu.memory_space<vmem>>, %arg3: memref<1x128xbf16, #tpu.memory_space<vmem>>, %arg4: memref<1x128xbf16, #tpu.memory_space<vmem>>, %arg5: memref<128x128xbf16, #tpu.memory_space<vmem>>, %arg6: memref<1x128xbf16, #tpu.memory_space<vmem>>, %arg7: memref<8x128xbf16, #tpu.memory_space<vmem>>) attributes {dimension_semantics = [#tpu.dimension_semantics<parallel>, #tpu.dimension_semantics<parallel>], iteration_bounds = array<i64: 1, 1>, scalar_prefetch = 0 : i64, scratch_operands = 0 : i64, tpu.core_type = #tpu.core_type<tc>, window_params = [{transform_indices = @transform_0, window_bounds = array<i64: 8, 128>}, {pipeline_mode = #tpu.pipeline_mode<synchronous>, transform_indices = @transform_1, window_bounds = array<i64: 1, 128>}, {pipeline_mode = #tpu.pipeline_mode<synchronous>, transform_indices = @transform_2, window_bounds = array<i64: 1, 128>}, {transform_indices = @transform_3, window_bounds = array<i64: 128, 128>}, {transform_indices = @transform_4, window_bounds = array<i64: 1, 128>}, {transform_indices = @transform_5, window_bounds = array<i64: 8, 128>}]} {
    %c0 = arith.constant 0 : index
    %c0_0 = arith.constant 0 : index
    %0 = vector.load %arg2[%c0, %c0_0] : memref<8x128xbf16, #tpu.memory_space<vmem>>, vector<8x128xbf16>
    %1 = arith.extf %0 : vector<8x128xbf16> to vector<8x128xf32>
    %cst = arith.constant dense<0.000000e+00> : vector<8xf32>
    %2 = vector.multi_reduction <add>, %1, %cst [1] : vector<8x128xf32> to vector<8xf32>
    %3 = vector.shape_cast %2 : vector<8xf32> to vector<8x1xf32>
    %cst_1 = arith.constant 1.280000e+02 : f32
    %4 = vector.broadcast %cst_1 : f32 to vector<8x1xf32>
    %5 = arith.divf %3, %4 : vector<8x1xf32>
    %6 = vector.broadcast %5 : vector<8x1xf32> to vector<8x128xf32>
    %7 = arith.subf %1, %6 : vector<8x128xf32>
    %8 = arith.mulf %7, %7 : vector<8x128xf32>
    %cst_2 = arith.constant dense<0.000000e+00> : vector<8xf32>
    %9 = vector.multi_reduction <add>, %8, %cst_2 [1] : vector<8x128xf32> to vector<8xf32>
    %10 = vector.shape_cast %9 : vector<8xf32> to vector<8x1xf32>
    %cst_3 = arith.constant 1.280000e+02 : f32
    %11 = vector.broadcast %cst_3 : f32 to vector<8x1xf32>
    %12 = arith.divf %10, %11 : vector<8x1xf32>
    %13 = vector.broadcast %5 : vector<8x1xf32> to vector<8x128xf32>
    %14 = arith.subf %1, %13 : vector<8x128xf32>
    %cst_4 = arith.constant 9.99999974E-6 : f32
    %15 = vector.broadcast %cst_4 : f32 to vector<8x1xf32>
    %16 = arith.addf %12, %15 : vector<8x1xf32>
    %17 = math.rsqrt %16 : vector<8x1xf32>
    %18 = vector.broadcast %17 : vector<8x1xf32> to vector<8x128xf32>
    %19 = arith.mulf %14, %18 : vector<8x128xf32>
    %c0_5 = arith.constant 0 : index
    %c0_6 = arith.constant 0 : index
    %20 = vector.load %arg3[%c0_5, %c0_6] : memref<1x128xbf16, #tpu.memory_space<vmem>>, vector<1x128xbf16>
    %21 = arith.extf %20 : vector<1x128xbf16> to vector<1x128xf32>
    %22 = vector.broadcast %21 : vector<1x128xf32> to vector<8x128xf32>
    %23 = arith.mulf %19, %22 : vector<8x128xf32>
    %c0_7 = arith.constant 0 : index
    %c0_8 = arith.constant 0 : index
    %24 = vector.load %arg4[%c0_7, %c0_8] : memref<1x128xbf16, #tpu.memory_space<vmem>>, vector<1x128xbf16>
    %25 = arith.extf %24 : vector<1x128xbf16> to vector<1x128xf32>
    %26 = vector.broadcast %25 : vector<1x128xf32> to vector<8x128xf32>
    %27 = arith.addf %23, %26 : vector<8x128xf32>
    %28 = arith.truncf %27 : vector<8x128xf32> to vector<8x128xbf16>
    %c0_9 = arith.constant 0 : index
    %c0_10 = arith.constant 0 : index
    %29 = vector.load %arg5[%c0_9, %c0_10] : memref<128x128xbf16, #tpu.memory_space<vmem>>, vector<128x128xbf16>
    %cst_11 = arith.constant dense<0.000000e+00> : vector<8x128xf32>
    %30 = tpu.matmul %28, %29, %cst_11 {dimension_numbers = #tpu.dot_dimension_numbers<[1], [0], [0], [1], [0, 0, 1, 1], [], []>} : vector<8x128xbf16>, vector<128x128xbf16>, vector<8x128xf32> -> vector<8x128xf32>
    %c0_12 = arith.constant 0 : index
    %c0_13 = arith.constant 0 : index
    %31 = vector.load %arg6[%c0_12, %c0_13] : memref<1x128xbf16, #tpu.memory_space<vmem>>, vector<1x128xbf16>
    %32 = arith.extf %31 : vector<1x128xbf16> to vector<1x128xf32>
    %33 = vector.broadcast %32 : vector<1x128xf32> to vector<8x128xf32>
    %34 = arith.addf %30, %33 : vector<8x128xf32>
    %35 = arith.truncf %34 : vector<8x128xf32> to vector<8x128xbf16>
    %c0_14 = arith.constant 0 : index
    %c0_15 = arith.constant 0 : index
    %36 = vector.load %arg7[%c0_14, %c0_15] : memref<8x128xbf16, #tpu.memory_space<vmem>>, vector<8x128xbf16>
    tpu.vector_store %arg7[%c0_14, %c0_15], %35 {strides = array<i32>} : memref<8x128xbf16, #tpu.memory_space<vmem>>, vector<8x128xbf16>,
    return
  }
  func.func @transform_0(%arg0: i32, %arg1: i32) -> (i32, i32) {
    %c0_i32 = arith.constant 0 : i32
    %c0_i32_0 = arith.constant 0 : i32
    return %arg0, %c0_i32 : i32, i32
  }
  func.func @transform_1(%arg0: i32, %arg1: i32) -> (i32, i32) {
    %c0_i32 = arith.constant 0 : i32
    %c0_i32_0 = arith.constant 0 : i32
    %c0_i32_1 = arith.constant 0 : i32
    return %c0_i32, %c0_i32_0 : i32, i32
  }
  func.func @transform_2(%arg0: i32, %arg1: i32) -> (i32, i32) {
    %c0_i32 = arith.constant 0 : i32
    %c0_i32_0 = arith.constant 0 : i32
    %c0_i32_1 = arith.constant 0 : i32
    return %c0_i32, %c0_i32_0 : i32, i32
  }
  func.func @transform_3(%arg0: i32, %arg1: i32) -> (i32, i32) {
    %c0_i32 = arith.constant 0 : i32
    %c0_i32_0 = arith.constant 0 : i32
    return %c0_i32, %arg1 : i32, i32
  }
  func.func @transform_4(%arg0: i32, %arg1: i32) -> (i32, i32) {
    %c0_i32 = arith.constant 0 : i32
    %c0_i32_0 = arith.constant 0 : i32
    return %c0_i32, %arg1 : i32, i32
  }
  func.func @transform_5(%arg0: i32, %arg1: i32) -> (i32, i32) {
    %c0_i32 = arith.constant 0 : i32
    return %arg0, %arg1 : i32, i32
  }
}

</mosaic_0001>

<bundles_post_ra>
// kernel: custom_vision_transformer_forward.14
= control target key start
LH: loop header
LB: loop body
LE: loop exit
PB: predicated region body
PF: predicated region fallthrough
CT: control target
= control target key end

     0   :  { %v43_v14 = vlaneseq  ;;  %s120_s0 = inlined_call_operand.vmem [shape: bf16[16,128], index: 0, kind: input, shape index: {}]   ;;  %s121_s1 = inlined_call_operand.vmem [shape: bf16[1,128], index: 1, kind: input, shape index: {}]   ;;  %s122_s2 = inlined_call_operand.vmem [shape: bf16[1,128], index: 2, kind: input, shape index: {}]   ;;  %s123_s3 = inlined_call_operand.vmem [shape: bf16[16,128], index: 3, kind: output, shape index: {}]  }
   0x1   :  { %v76_v0 = vld [vmem:[%s120_s0] sm:$0xff]  }
   0x2   :  { %v77_v1 = vunpack.c.l.bf16 %v76_v0  ;;  %v78_v2 = vunpack.c.h.bf16 %v76_v0  ;;  %v44_v18 = vshrl.u32 %v43_v14, 7  ;;  %v41_v19 = vld [vmem:[%s121_s1] sm:$0x1] }
   0x3   :  { %v42_v20 = vunpack.c.l.bf16 %v41_v19  ;;  %v49_v22 = vld [vmem:[%s122_s2] sm:$0x1] }
   0x4   :  { %18 = vadd.xlane.f32.xlu0 %v77_v1  ;;  %v45_v21 = vsub.s32 0, %v44_v18  ;;  %v50_v25 = vunpack.c.l.bf16 %v49_v22 }
   0x6   :  { %v46_v24 = vrot.slane %v42_v20, %v45_v21  ;;  %v54_v28 = vrot.slane %v50_v25, %v45_v21 }
   0x8   :  { %20 = vadd.xlane.f32.xlu0 %v78_v2 }
  0x91   :  { %v19_v3 = vpop.xlane.xlu0 %18 }
  0x92   :  { %v23_v4 = vmul.f32 0.0078125, %v19_v3 }
  0x94   :  { %v25_v5 = vsub.f32 %v77_v1, %v23_v4 }
  0x95   :  { %v21_v6 = vpop.xlane.xlu0 %20 }
  0x96   :  { %v24_v7 = vmul.f32 0.0078125, %v21_v6  ;;  %v27_v8 = vmul.f32 %v25_v5, %v25_v5 }
  0x98   :  { %v26_v9 = vsub.f32 %v78_v2, %v24_v7  ;;  %29 = vadd.xlane.f32.xlu1 %v27_v8 }
  0x9a   :  { %v28_v10 = vmul.f32 %v26_v9, %v26_v9 }
  0x9c   :  { %31 = vadd.xlane.f32.xlu1 %v28_v10 }
 0x125   :  { %v30_v11 = vpop.xlane.xlu1 %29 }
 0x126   :  { %v33_v12 = vmul.f32 0.0078125, %v30_v11 }
 0x128   :  { %v35_v13 = vadd.f32 1e-05, %v33_v12 }
 0x129   :  { %v32_v15 = vpop.xlane.xlu1 %31 }
 0x12a   :  { %84 = vrsqrt.f32 %v35_v13  ;;  %v34_v16 = vmul.f32 0.0078125, %v32_v15 }
 0x12c   :  { %v36_v17 = vadd.f32 1e-05, %v34_v16 }
 0x12e   :  { %86 = vrsqrt.f32 %v36_v17 }
 0x134   :  { %v85_v23 = vpop.eup %84 }
 0x135   :  { %v39_v26 = vmul.f32 %v85_v23, %v25_v5 }
 0x137   :  { %v47_v29 = vmul.f32 %v46_v24, %v39_v26 }
 0x138   :  { %v87_v27 = vpop.eup %86 }
 0x139   :  { %v40_v30 = vmul.f32 %v87_v27, %v26_v9  ;;  %v55_v32 = vadd.f32 %v54_v28, %v47_v29 }
 0x13b   :  { %v48_v31 = vmul.f32 %v46_v24, %v40_v30 }
 0x13d   :  { %v56_v33 = vadd.f32 %v54_v28, %v48_v31 }
 0x13f   :  { %v82_v34 = vpack.c.bf16 %v56_v33, %v55_v32 }
 0x141   :  { %83 = vst [vmem:[%s123_s3] sm:$0xff] %v82_v34  }

// kernel: custom_vision_transformer_forward.16
= control target key start
LH: loop header
LB: loop body
LE: loop exit
PB: predicated region body
PF: predicated region fallthrough
CT: control target
= control target key end

     0   :  { %s787_s12 = smov 0   ;;  %s789_s13 = smov 0   ;;  %s857_s0 = inlined_call_operand.vmem [shape: bf16[2,8,384], index: 0, kind: input, shape index: {}, may-alias: {0,1,2}]   ;;  %s858_s1 = inlined_call_operand.vmem [shape: bf16[2,8,384], index: 1, kind: input, shape index: {}, may-alias: {0,1,2}]   ;;  %s859_s2 = inlined_call_operand.vmem [shape: bf16[2,8,384], index: 2, kind: input, shape index: {}, may-alias: {0,1,2}]   ;;  %s860_s3 = inlined_call_operand.vmem [shape: bf16[2,8,128], index: 3, kind: output, shape index: {}]  }
   0x1   :  { %s791_s14 = smov 0  }
   0x2 LB: > { %s25_s15 = sadd.s32 1, %s758_s13  ;;  %p647_p0 = scmp.ge.s32.totalorder %s762_s14, 1  ;;  %s762_s14 = sphi %s791_s14, %s13_s14   ;;  %s758_s13 = sphi %s789_s13, %s862_s13   ;;  %s754_s12 = sphi %s787_s12, %s861_s12  }
   0x3   : > { %p27_p1 = scmp.ge.s32.totalorder %s25_s15, 2  ;;  %p194_p2 = scmp.lt.s32.totalorder %s762_s14, 3 }
   0x5   : > { %s864_s15 = smov (%p27_p1, %s25_s15), 0  ;;  %p195_p3 = pnand %p647_p0, %p194_p2 }
   0x6   : > { %p241_p4 = scmp.lt.s32.totalorder (!%p195_p3), %s754_s12, 1  ;;  %v764_v0 = vmov (!%p195_p3), 0.0   ;;  %vm765_vm0 = vmmov (!%p195_p3), 0   ;;  %vm283_vm1 = vcmask (!%p195_p3), 523264   ;;  %s766_s24 = smov (!%p195_p3), 64   ;;  %v277_v5 = vlaneseq (!%p195_p3) }
   0x7   : > { %198 = sbr.rel (%p195_p3) target bundleno = 1118 (0x45e), region = 32  ;;  %675 = vmatprep.subr.bf16.mxu0 (!%p195_p3), %v764_v0  ;;  %677 = vmatprep.mubr.msk.bf16.mxu0 (!%p195_p3), %vm765_vm0, %v764_v0  ;;  %vm334_vm3 = vcmask (!%p195_p3), 64512   ;;  %vm348_vm4 = vcmask (!%p195_p3), 1043456   ;;  %vm395_vm5 = vcmask (!%p195_p3), 519168   ;;  %vm528_vm6 = vcmask (!%p195_p3), 1043968  }
   0x8   : > { %681 = vmatprep.subr.bf16.mxu1 (!%p195_p3), %v764_v0  ;;  %683 = vmatprep.mubr.msk.bf16.mxu1 (!%p195_p3), %vm765_vm0, %v764_v0  ;;  %v278_v6 = vand.u32 (!%p195_p3), 127, %v277_v5 }
   0xa   : > { %vm279_vm2 = vcmp.lt.s32.totalorder (!%p195_p3), %v278_v6, 7 }
   0xe   : > { %s866_s12 = smov (!%p241_p4, %s754_s12), 1 }
   0xf   : > { %s810_s16 = smul.u32 12, %s866_s12  ;;  %s651_s29 = sshll.u32 %s866_s12, 2 }
  0x10   : > { %s275_s5 = scalar_lea.vmem %s860_s3, %s651_s29 }
  0x11   : > { %s663_s17 = sadd.s32 4, %s810_s16  ;;  %s248_s20 = scalar_lea.vmem %s857_s0, %s810_s16 }
  0x12   : > { %s257_s23 = scalar_lea.vmem %s858_s1, %s663_s17  ;;  %v280_v3 = vld [vmem:[%s248_s20] sm:$0xf]  ;;  %s665_s25 = sadd.s32 8, %s810_s16 }
  0x13   : > { %v281_v1 = vld [vmem:[%s257_s23] sm:$0xf]  ;;  %s267_s28 = scalar_lea.vmem %s859_s2, %s665_s25 }
  0x14   : > { %v288_v2 = vsel %vm283_vm1, %v281_v1, 0  ;;  %v730_v4 = vld [vmem:[%s248_s20] ss:$0 sps:$4 sm:$0xff]  }
  0x15   : > { %676 = vmatpush3.bf16.xpose.msra.mxu0 %v288_v2  ;;  %403 = vrot.lane.b32.xlu1 %v730_v4, %s766_s24  ;;  %v729_v14 = vld [vmem:[%s257_s23] ss:$0 sps:$4 sm:$0xff]  }
  0x16   : > { %693 = vmatprep.subr.bf16.mxu0 %v764_v0  ;;  %v282_v15 = vld [vmem:[%s267_s28] sm:$0xf] }
  0x17   : > { %v350_v16 = vsel %vm348_vm4, %v282_v15, 0  ;;  %v731_v17 = vld [vmem:[%s267_s28] ss:$0 sps:$4 sm:$0xff]  }
  0x18   : > { %682 = vmatpush3.bf16.msra.mxu1 %v350_v16 }
  0x19   : > { %687 = vmatprep.subr.bf16.mxu1 %v764_v0 }
  0x1c   : > { %678 = vmatmul.mubr.msk.bf16.vlgmr.msra.gmra.mrb[0].mxu0 %vm283_vm1, %v280_v3 }
  0x1d   : > { %695 = vmatprep.mubr.msk.bf16.mxu0 %vm765_vm0, %v764_v0 }
  0x87   : > { %v404_v25 = vpop.permute.xlu1 %403 }
  0xef   : > { %v324_v7 = vpop.f32.mrb[0].mxu0 }
  0xf0   : > { %v330_v8 = vmul.f32 0.125, %v324_v7  ;;  %v679_v9 = vpop.f32.mrb[1].mxu0 }
  0xf1   : > { %v327_v10 = vpop.f32.mrb[2].mxu0 }
  0xf2   : > { %v680_v11 = vpop.f32.mrb[3].mxu0  ;;  %v333_v12 = vsel %vm279_vm2, %v330_v8, -1e+30 }
  0xf3   : > { %v335_v13 = vsel %vm334_vm3, %v333_v12, -inf }
  0xf4   : > { %336 = vmax.xlane.f32.xlu0 %v335_v13 }
 0x10a   : > { %408 = vrot.lane.b32.xlu0 %v729_v14, %s766_s24 }
 0x10e   : > { %471 = vrot.lane.b32.xlu0 %v731_v17, %s766_s24 }
 0x181   : > { %v337_v18 = vpop.xlane.xlu0 %336 }
 0x182   : > { %v338_v19 = vsub.f32 %v333_v12, %v337_v18 }
 0x184   : > { %v339_v20 = vmul.f32 1.442695, %v338_v19 }
 0x185   : > { %v409_v21 = vpop.permute.xlu0 %408 }
 0x186   : > { %732 = vpow2.f32 %v339_v20  ;;  %v414_v23 = vsel %vm283_vm1, %v409_v21, 0 }
 0x189   : > { %v472_v38 = vpop.permute.xlu0 %471 }
 0x18a   : > { %v477_v39 = vsel %vm348_vm4, %v472_v38, 0 }
 0x18b   : > { %694 = vmatpush3.bf16.msra.mxu0 %v477_v39 }
 0x190   : > { %v733_v22 = vpop.eup %732 }
 0x191   : > { %v344_v24 = vpack.c.bf16 %v733_v22, %v733_v22  ;;  %v341_v37 = vsel %vm334_vm3, %v733_v22, 0.0 }
 0x193   : > { %684 = vmatmul.mubr.msk.bf16.vlgmr.msra.gmra.mrb[0].mxu1 %vm334_vm3, %v344_v24 }
 0x194   : > { %688 = vmatpush3.bf16.xpose.msra.mxu1 %v414_v23  ;;  %689 = vmatprep.mubr.msk.bf16.mxu1 %vm765_vm0, %v764_v0 }
 0x19b   : > { %690 = vmatmul.mubr.msk.bf16.vlgmr.msra.gmra.mrb[4].mxu1 %vm283_vm1, %v404_v25 }
 0x266   : > { %v386_v26 = vpop.f32.mrb[0].mxu1 }
 0x267   : > { %v685_v27 = vpop.f32.mrb[1].mxu1 }
 0x268   : > { %v389_v28 = vpop.f32.mrb[2].mxu1 }
 0x269   : > { %v686_v29 = vpop.f32.mrb[3].mxu1 }
 0x26e   : > { %v450_v30 = vpop.f32.mrb[4].mxu1 }
 0x26f   : > { %v456_v31 = vmul.f32 0.125, %v450_v30  ;;  %v691_v32 = vpop.f32.mrb[5].mxu1 }
 0x270   : > { %v453_v33 = vpop.f32.mrb[6].mxu1 }
 0x271   : > { %v692_v34 = vpop.f32.mrb[7].mxu1  ;;  %v457_v35 = vsel %vm279_vm2, %v456_v31, -1e+30 }
 0x272   : > { %v458_v36 = vsel %vm334_vm3, %v457_v35, -inf }
 0x273   : > { %459 = vmax.xlane.f32.xlu1 %v458_v36 }
 0x277   : > { %342 = vadd.xlane.f32.xlu1 %v341_v37 }
 0x300   : > { %v460_v40 = vpop.xlane.xlu1 %459 }
 0x301   : > { %v461_v41 = vsub.f32 %v457_v35, %v460_v40 }
 0x303   : > { %v462_v42 = vmul.f32 1.442695, %v461_v41 }
 0x304   : > { %v343_v43 = vpop.xlane.xlu1 %342 }
 0x305   : > { %734 = vpow2.f32 %v462_v42 }
 0x306   : > { %736 = vrcp.f32 %v343_v43 }
 0x30f   : > { %v735_v44 = vpop.eup %734 }
 0x310   : > { %v737_v45 = vpop.eup %736  ;;  %v464_v46 = vsel %vm334_vm3, %v735_v44, 0.0  ;;  %v467_v47 = vpack.c.bf16 %v735_v44, %v735_v44 }
 0x311   : > { %v393_v48 = vmul.f32 %v737_v45, %v386_v26  ;;  %465 = vadd.xlane.f32.xlu0 %v464_v46 }
 0x312   : > { %696 = vmatmul.mubr.msk.bf16.vlgmr.msra.gmra.mrb[4].mxu0 %vm334_vm3, %v467_v47 }
 0x313   : > { %v394_v49 = vpack.c.bf16 %v393_v48, %v393_v48 }
 0x315   : > { %396 = vst.msk [vmem:[%s275_s5] sm:$0xf] %vm395_vm5, %v394_v49 }
 0x39e   : > { %v466_v50 = vpop.xlane.xlu0 %465 }
 0x39f   : > { %738 = vrcp.f32 %v466_v50 }
 0x3a9   : > { %v739_v51 = vpop.eup %738 }
 0x3e5   : > { %v513_v52 = vpop.f32.mrb[4].mxu0 }
 0x3e6   : > { %v520_v53 = vmul.f32 %v739_v51, %v513_v52  ;;  %v697_v54 = vpop.f32.mrb[5].mxu0 }
 0x3e7   : > { %v516_v55 = vpop.f32.mrb[6].mxu0 }
 0x3e8   : > { %v666_v56 = vpack.c.bf16 %v520_v53, %v520_v53  ;;  %v698_v57 = vpop.f32.mrb[7].mxu0 }
 0x3ea   : > { %525 = vrot.lane.b32.xlu1 %v666_v56, %s766_s24 }
 0x45c   : > { %v526_v58 = vpop.permute.xlu1 %525 }
 0x45d   : > { %529 = vst.msk [vmem:[%s275_s5] sm:$0xf] %vm528_vm6, %v526_v58 }
 0x45e PF: > { %s13_s14 = sadd.s32 1, %s762_s14   ;;  %s861_s12 = smov %s758_s13 }
 0x45f   : > { %p10_p5 = scmp.ge.s32.totalorder %s13_s14, 4   ;;  %s862_s13 = smov %s864_s15 }
 0x461   :  { %12 = sbr.rel (!%p10_p5) target bundleno = 2 (0x2), region = 68 }

// kernel: custom_vision_transformer_forward.13
= control target key start
LH: loop header
LB: loop body
LE: loop exit
PB: predicated region body
PF: predicated region fallthrough
CT: control target
= control target key end

     0   :  { %v205_v19 = vlaneseq  ;;  %s351_s1 = inlined_call_operand.vmem [shape: bf16[256,128], index: 1, kind: input, shape index: {}]   ;;  %s352_s0 = inlined_call_operand.vmem [shape: bf16[8,256], index: 0, kind: input, shape index: {}]   ;;  %s353_s2 = inlined_call_operand.vmem [shape: bf16[1,128], index: 2, kind: input, shape index: {}]   ;;  %s354_s3 = inlined_call_operand.vmem [shape: bf16[8,128], index: 3, kind: output, shape index: {}]  }
   0x1   :  { %v256_v0 = vld [vmem:[%s351_s1 + $0x40] sm:$0xff]   ;;  %v258_v2 = vld [vmem:[%s351_s1 + $0x48] sm:$0xff]   ;;  %v260_v4 = vld [vmem:[%s351_s1 + $0x50] sm:$0xff]  }
   0x2   :  { %v257_v1 = vld [vmem:[%s351_s1] sm:$0xff]   ;;  %234 = vmatprep.subr.bf16.mxu0 %v256_v0  ;;  %v259_v3 = vld [vmem:[%s351_s1 + $0x8] sm:$0xff]   ;;  %v261_v5 = vld [vmem:[%s351_s1 + $0x10] sm:$0xff]   ;;  %v206_v20 = vshrl.u32 %v205_v19, 7 }
   0x3   :  { %235 = vmatpush3.bf16.msra.mxu0 %v257_v1  ;;  %v262_v6 = vld [vmem:[%s351_s1 + $0x58] sm:$0xff]   ;;  %v264_v8 = vld [vmem:[%s351_s1 + $0x60] sm:$0xff]   ;;  %v266_v10 = vld [vmem:[%s351_s1 + $0x68] sm:$0xff]  }
   0x4   :  { %236 = vmatprep.subr.bf16.mxu0 %v258_v2  ;;  %v263_v7 = vld [vmem:[%s351_s1 + $0x18] sm:$0xff]   ;;  %v265_v9 = vld [vmem:[%s351_s1 + $0x20] sm:$0xff]   ;;  %v267_v13 = vld [vmem:[%s351_s1 + $0x28] sm:$0xff]   ;;  %v207_v23 = vsub.s32 0, %v206_v20 }
   0x5   :  { %v21_v11 = vld [vmem:[%s352_s0] sm:$0xff]  ;;  %v268_v14 = vld [vmem:[%s351_s1 + $0x70] sm:$0xff]   ;;  %v270_v16 = vld [vmem:[%s351_s1 + $0x78] sm:$0xff]  }
   0x6   :  { %v217_v12 = vcombine.high %v21_v11, %v21_v11  ;;  %v269_v15 = vld [vmem:[%s351_s1 + $0x30] sm:$0xff]   ;;  %v271_v17 = vld [vmem:[%s351_s1 + $0x38] sm:$0xff]   ;;  %v216_v18 = vcombine.low %v21_v11, %v21_v11  ;;  %v203_v21 = vld [vmem:[%s353_s2] sm:$0x1] }
   0x7   :  { %237 = vmatpush3.bf16.msra.mxu0 %v259_v3  ;;  %v204_v22 = vunpack.c.l.bf16 %v203_v21 }
   0x8   :  { %238 = vmatprep.subr.bf16.mxu0 %v260_v4  ;;  %189 = vmatprep.mubr.bf16.mxu0 %v217_v12 }
   0x9   :  { %v208_v25 = vrot.slane %v204_v22, %v207_v23 }
   0xb   :  { %239 = vmatpush3.bf16.msra.mxu0 %v261_v5 }
   0xc   :  { %240 = vmatprep.subr.bf16.mxu0 %v262_v6 }
   0xf   :  { %241 = vmatpush3.bf16.msra.mxu0 %v263_v7 }
  0x10   :  { %242 = vmatprep.subr.bf16.mxu0 %v264_v8 }
  0x13   :  { %243 = vmatpush3.bf16.msra.mxu0 %v265_v9 }
  0x14   :  { %244 = vmatprep.subr.bf16.mxu0 %v266_v10 }
  0x17   :  { %245 = vmatpush3.bf16.msra.mxu0 %v267_v13 }
  0x18   :  { %246 = vmatprep.subr.bf16.mxu0 %v268_v14 }
  0x1b   :  { %247 = vmatpush3.bf16.msra.mxu0 %v269_v15 }
  0x1c   :  { %248 = vmatprep.subr.bf16.mxu0 %v270_v16 }
  0x1f   :  { %249 = vmatpush3.bf16.msra.mxu0 %v271_v17 }
  0x22   :  { %190 = vmatmul.mubr.bf16.vlgmr.msra.gmra.mrb[0].mxu0 %v216_v18 }
  0xf5   :  { %v250_v24 = vpop.f32.mrb[0].mxu0 }
  0xf6   :  { %v251_v26 = vpop.f32.mrb[1].mxu0 }
  0xf7   :  { %v252_v27 = vadd.f32 %v251_v26, %v250_v24  ;;  %v253_v28 = vpop.f32.mrb[2].mxu0 }
  0xf8   :  { %v254_v29 = vpop.f32.mrb[3].mxu0 }
  0xf9   :  { %v209_v30 = vadd.f32 %v252_v27, %v208_v25 }
  0xfb   :  { %v210_v31 = vpack.c.bf16 %v209_v30, %v209_v30 }
  0xfd   :  { %211 = vst [vmem:[%s354_s3] sm:$0xf] %v210_v31 }

// kernel: custom_vision_transformer_forward.15
= control target key start
LH: loop header
LB: loop body
LE: loop exit
PB: predicated region body
PF: predicated region fallthrough
CT: control target
= control target key end

     0   :  { %v471_v4 = vmov 0.0   ;;  %v472_v31 = vmov 0   ;;  %vm473_vm0 = vmmov 0   ;;  %v50_v41 = vlaneseq  ;;  %s619_s0 = inlined_call_operand.vmem [shape: bf16[16,128], index: 0, kind: input, shape index: {}]   ;;  %s620_s3 = inlined_call_operand.vmem [shape: bf16[128,384], index: 3, kind: input, shape index: {}]   ;;  %s621_s1 = inlined_call_operand.vmem [shape: bf16[1,128], index: 1, kind: input, shape index: {}]   ;;  %s622_s2 = inlined_call_operand.vmem [shape: bf16[1,128], index: 2, kind: input, shape index: {}]   ;;  %s623_s4 = inlined_call_operand.vmem [shape: bf16[1,384], index: 4, kind: input, shape index: {}]   ;;  %s624_s5 = inlined_call_operand.vmem [shape: bf16[16,384], index: 5, kind: output, shape index: {}]  }
   0x1   :  { %v400_v0 = vld [vmem:[%s619_s0] sm:$0xff]   ;;  %412 = vmatprep.subr.bf16.mxu1 %v471_v4  ;;  %v438_v6 = vld [vmem:[%s620_s3 + $0x8] ss:$12 sps:$4 sm:$0xff]   ;;  %v445_v19 = vld [vmem:[%s620_s3 + $0x30] ss:$12 sps:$4 sm:$0xff]   ;;  %287 = vmatprep.mubr.bf16.mxu0 %v472_v31 }
   0x2   :  { %v401_v1 = vunpack.c.l.bf16 %v400_v0  ;;  %v402_v2 = vunpack.c.h.bf16 %v400_v0  ;;  %v435_v3 = vld [vmem:[%s620_s3 + $0x4] ss:$12 sps:$4 sm:$0xff]   ;;  %v437_v5 = vld [vmem:[%s620_s3] ss:$12 sps:$4 sm:$0xff]   ;;  %v439_v7 = vld [vmem:[%s620_s3 + $0x1c] ss:$12 sps:$4 sm:$0xff]   ;;  %413 = vmatpush3.bf16.msra.mxu1 %v438_v6  ;;  %428 = vmatprep.mubr.msk.bf16.mxu1 %vm473_vm0, %v471_v4 }
   0x3   :  { %255 = vmatprep.subr.bf16.mxu0 %v435_v3  ;;  %414 = vmatprep.subr.bf16.mxu1 %v471_v4  ;;  %v441_v16 = vld [vmem:[%s620_s3 + $0x18] ss:$12 sps:$4 sm:$0xff]   ;;  %v442_v17 = vld [vmem:[%s620_s3 + $0x20] ss:$12 sps:$4 sm:$0xff]   ;;  %v449_v22 = vld [vmem:[%s620_s3 + $0x48] ss:$12 sps:$4 sm:$0xff]  }
   0x4   :  { %25 = vadd.xlane.f32.xlu0 %v401_v1  ;;  %256 = vmatpush1.bf16.msra.mxu0 %v437_v5  ;;  %v443_v18 = vld [vmem:[%s620_s3 + $0x34] ss:$12 sps:$4 sm:$0xff]   ;;  %v446_v20 = vld [vmem:[%s620_s3 + $0x38] ss:$12 sps:$4 sm:$0xff]   ;;  %v450_v23 = vld [vmem:[%s620_s3 + $0x50] ss:$12 sps:$4 sm:$0xff]  }
   0x5   :  { %257 = vmatprep.subr.bf16.mxu0 %v439_v7  ;;  %v447_v21 = vld [vmem:[%s620_s3 + $0x4c] ss:$12 sps:$4 sm:$0xff]   ;;  %v451_v24 = vld [vmem:[%s620_s3 + $0x64] ss:$12 sps:$4 sm:$0xff]   ;;  %v454_v26 = vld [vmem:[%s620_s3 + $0x68] ss:$12 sps:$4 sm:$0xff]  }
   0x6   :  { %415 = vmatpush3.bf16.msra.mxu1 %v442_v17  ;;  %v453_v25 = vld [vmem:[%s620_s3 + $0x60] ss:$12 sps:$4 sm:$0xff]   ;;  %v455_v27 = vld [vmem:[%s620_s3 + $0x7c] ss:$12 sps:$4 sm:$0xff]   ;;  %v457_v28 = vld [vmem:[%s620_s3 + $0x78] ss:$12 sps:$4 sm:$0xff]  }
   0x7   :  { %416 = vmatprep.subr.bf16.mxu1 %v471_v4  ;;  %v458_v29 = vld [vmem:[%s620_s3 + $0x80] ss:$12 sps:$4 sm:$0xff]   ;;  %v461_v32 = vld [vmem:[%s620_s3 + $0x90] ss:$12 sps:$4 sm:$0xff]   ;;  %v462_v33 = vld [vmem:[%s620_s3 + $0x98] ss:$12 sps:$4 sm:$0xff]  }
   0x8   :  { %27 = vadd.xlane.f32.xlu0 %v402_v2  ;;  %258 = vmatpush1.bf16.msra.mxu0 %v441_v16  ;;  %v459_v30 = vld [vmem:[%s620_s3 + $0x94] ss:$12 sps:$4 sm:$0xff]   ;;  %v463_v34 = vld [vmem:[%s620_s3 + $0xac] ss:$12 sps:$4 sm:$0xff]   ;;  %v466_v36 = vld [vmem:[%s620_s3 + $0xb0] ss:$12 sps:$4 sm:$0xff]  }
   0x9   :  { %259 = vmatprep.subr.bf16.mxu0 %v443_v18  ;;  %v465_v35 = vld [vmem:[%s620_s3 + $0xa8] ss:$12 sps:$4 sm:$0xff]   ;;  %v51_v44 = vshrl.u32 %v50_v41, 7  ;;  %v48_v45 = vld [vmem:[%s621_s1] sm:$0x1] }
   0xa   :  { %417 = vmatpush3.bf16.msra.mxu1 %v446_v20  ;;  %v49_v46 = vunpack.c.l.bf16 %v48_v45  ;;  %v56_v48 = vld [vmem:[%s622_s2] sm:$0x1] }
   0xb   :  { %418 = vmatprep.subr.bf16.mxu1 %v471_v4  ;;  %v52_v47 = vsub.s32 0, %v51_v44  ;;  %v57_v52 = vunpack.c.l.bf16 %v56_v48  ;;  %v97_v61 = vld [vmem:[%s623_s4] sm:$0x7]  ;;  %v110_v63 = vsub.s32 4, %v51_v44  ;;  %v106_v0 = vsub.s32 2, %v51_v44 }
   0xc   :  { %260 = vmatpush1.bf16.msra.mxu0 %v445_v19  ;;  %v98_v62 = vunpack.c.l.bf16 %v97_v61 }
   0xd   :  { %261 = vmatprep.subr.bf16.mxu0 %v447_v21  ;;  %v53_v51 = vrot.slane %v49_v46, %v52_v47  ;;  %v61_v56 = vrot.slane %v57_v52, %v52_v47 }
   0xe   :  { %419 = vmatpush3.bf16.msra.mxu1 %v450_v23  ;;  %v107_v3 = vrot.slane %v98_v62, %v106_v0 }
   0xf   :  { %420 = vmatprep.subr.bf16.mxu1 %v471_v4 }
  0x10   :  { %262 = vmatpush1.bf16.msra.mxu0 %v449_v22  ;;  %v122_v6 = vrot.slane %v107_v3, %v52_v47 }
  0x11   :  { %263 = vmatprep.subr.bf16.mxu0 %v451_v24 }
  0x12   :  { %421 = vmatpush3.bf16.msra.mxu1 %v454_v26 }
  0x13   :  { %422 = vmatprep.subr.bf16.mxu1 %v471_v4 }
  0x14   :  { %264 = vmatpush1.bf16.msra.mxu0 %v453_v25 }
  0x15   :  { %265 = vmatprep.subr.bf16.mxu0 %v455_v27 }
  0x16   :  { %423 = vmatpush3.bf16.msra.mxu1 %v458_v29 }
  0x17   :  { %424 = vmatprep.subr.bf16.mxu1 %v471_v4 }
  0x18   :  { %266 = vmatpush1.bf16.msra.mxu0 %v457_v28 }
  0x19   :  { %267 = vmatprep.subr.bf16.mxu0 %v459_v30 }
  0x1a   :  { %425 = vmatpush3.bf16.msra.mxu1 %v462_v33 }
  0x1b   :  { %426 = vmatprep.subr.bf16.mxu1 %v471_v4 }
  0x1c   :  { %268 = vmatpush1.bf16.msra.mxu0 %v461_v32 }
  0x1d   :  { %269 = vmatprep.subr.bf16.mxu0 %v463_v34 }
  0x1e   :  { %427 = vmatpush3.bf16.msra.mxu1 %v466_v36 }
  0x20   :  { %270 = vmatpush1.bf16.msra.mxu0 %v465_v35 }
  0x91   :  { %v26_v8 = vpop.xlane.xlu0 %25 }
  0x92   :  { %v30_v9 = vmul.f32 0.0078125, %v26_v8 }
  0x94   :  { %v521_v10 = vsub.f32 %v401_v1, %v30_v9  ;;  %v103_v1 = vrot.slane %v98_v62, %v52_v47 }
  0x95   :  { %v28_v11 = vpop.xlane.xlu0 %27 }
  0x96   :  { %v31_v12 = vmul.f32 0.0078125, %v28_v11  ;;  %v34_v13 = vmul.f32 %v521_v10, %v521_v10  ;;  %v118_v4 = vrot.slane %v103_v1, %v52_v47 }
  0x98   :  { %v525_v14 = vsub.f32 %v402_v2, %v31_v12  ;;  %36 = vadd.xlane.f32.xlu1 %v34_v13  ;;  %v111_v2 = vrot.slane %v98_v62, %v110_v63 }
  0x9a   :  { %v35_v15 = vmul.f32 %v525_v14, %v525_v14  ;;  %v126_v5 = vrot.slane %v111_v2, %v52_v47 }
  0x9c   :  { %38 = vadd.xlane.f32.xlu1 %v35_v15 }
 0x125   :  { %v37_v37 = vpop.xlane.xlu1 %36 }
 0x126   :  { %v40_v38 = vmul.f32 0.0078125, %v37_v37 }
 0x128   :  { %v42_v39 = vadd.f32 1e-05, %v40_v38 }
 0x129   :  { %v39_v40 = vpop.xlane.xlu1 %38 }
 0x12a   :  { %467 = vrsqrt.f32 %v42_v39  ;;  %v41_v42 = vmul.f32 0.0078125, %v39_v40 }
 0x12c   :  { %v43_v43 = vadd.f32 1e-05, %v41_v42 }
 0x12e   :  { %469 = vrsqrt.f32 %v43_v43 }
 0x134   :  { %v468_v49 = vpop.eup %467 }
 0x135   :  { %v46_v50 = vmul.f32 %v468_v49, %v521_v10 }
 0x137   :  { %v54_v55 = vmul.f32 %v53_v51, %v46_v50 }
 0x138   :  { %v470_v53 = vpop.eup %469 }
 0x139   :  { %v47_v54 = vmul.f32 %v470_v53, %v525_v14  ;;  %v62_v58 = vadd.f32 %v61_v56, %v54_v55 }
 0x13b   :  { %v55_v57 = vmul.f32 %v53_v51, %v47_v54 }
 0x13d   :  { %v63_v59 = vadd.f32 %v61_v56, %v55_v57 }
 0x13f   :  { %v64_v60 = vpack.c.bf16 %v63_v59, %v62_v58 }
 0x141   :  { %288 = vmatmul.mubr.bf16.vlgmr.msra.gmra.mrb[0].mxu0 %v64_v60  ;;  %429 = vmatmul.mubr.bf16.vlgmr.msra.gmra.mrb[0].mxu1 %v64_v60 }
 0x214   :  { %v289_v7 = vpop.f32.mrb[0].mxu0  ;;  %v332_v8 = vpop.f32.mrb[0].mxu1 }
 0x215   :  { %v290_v9 = vadd.f32 %v289_v7, %v118_v4  ;;  %v333_v10 = vadd.f32 %v332_v8, %v126_v5  ;;  %v291_v11 = vpop.f32.mrb[1].mxu0  ;;  %v430_v12 = vpop.f32.mrb[1].mxu1 }
 0x216   :  { %v292_v13 = vadd.f32 %v291_v11, %v122_v6  ;;  %v293_v14 = vpop.f32.mrb[2].mxu0  ;;  %v335_v15 = vpop.f32.mrb[2].mxu1 }
 0x217   :  { %v396_v16 = vpack.c.bf16 %v333_v10, %v333_v10  ;;  %v294_v17 = vadd.f32 %v293_v14, %v118_v4  ;;  %v336_v18 = vadd.f32 %v335_v15, %v126_v5  ;;  %v295_v19 = vpop.f32.mrb[3].mxu0  ;;  %v431_v20 = vpop.f32.mrb[3].mxu1 }
 0x218   :  { %v395_v21 = vpack.c.bf16 %v292_v13, %v290_v9  ;;  %v296_v22 = vadd.f32 %v295_v19, %v122_v6 }
 0x219   :  { %360 = vst [vmem:[%s624_s5 + $0x8] sm:$0xf] %v396_v16  ;;  %v398_v23 = vpack.c.bf16 %v336_v18, %v336_v18 }
 0x21a   :  { %359 = vst [vmem:[%s624_s5] sm:$0xff] %v395_v21  ;;  %v397_v24 = vpack.c.bf16 %v296_v22, %v294_v17 }
 0x21b   :  { %362 = vst [vmem:[%s624_s5 + $0x14] sm:$0xf] %v398_v23 }
 0x21c   :  { %361 = vst [vmem:[%s624_s5 + $0xc] sm:$0xff] %v397_v24 }

// kernel: custom_vision_transformer_forward.17
= control target key start
LH: loop header
LB: loop body
LE: loop exit
PB: predicated region body
PF: predicated region fallthrough
CT: control target
= control target key end

     0   :  { %v238_v0 = vmov 0.0   ;;  %vm239_vm0 = vmmov 0   ;;  %v150_v10 = vlaneseq  ;;  %s301_s1 = inlined_call_operand.vmem [shape: bf16[128,128], index: 1, kind: input, shape index: {}]   ;;  %s302_s0 = inlined_call_operand.vmem [shape: bf16[16,128], index: 0, kind: input, shape index: {}]   ;;  %s303_s2 = inlined_call_operand.vmem [shape: bf16[1,128], index: 2, kind: input, shape index: {}]   ;;  %s304_s3 = inlined_call_operand.vmem [shape: bf16[16,128], index: 3, kind: input, shape index: {}]   ;;  %s305_s4 = inlined_call_operand.vmem [shape: bf16[16,128], index: 4, kind: output, shape index: {}]  }
   0x1   :  { %207 = vmatprep.subr.bf16.mxu0 %v238_v0  ;;  %v229_v1 = vld [vmem:[%s301_s1] sm:$0xff]   ;;  %223 = vmatprep.mubr.msk.bf16.mxu0 %vm239_vm0, %v238_v0  ;;  %v230_v2 = vld [vmem:[%s301_s1 + $0x8] sm:$0xff]   ;;  %v231_v3 = vld [vmem:[%s301_s1 + $0x10] sm:$0xff]  }
   0x2   :  { %208 = vmatpush3.bf16.msra.mxu0 %v229_v1  ;;  %v232_v4 = vld [vmem:[%s301_s1 + $0x18] sm:$0xff]   ;;  %v233_v5 = vld [vmem:[%s301_s1 + $0x20] sm:$0xff]   ;;  %v234_v6 = vld [vmem:[%s301_s1 + $0x28] sm:$0xff]   ;;  %v151_v11 = vshrl.u32 %v150_v10, 7 }
   0x3   :  { %209 = vmatprep.subr.bf16.mxu0 %v238_v0  ;;  %v235_v7 = vld [vmem:[%s301_s1 + $0x30] sm:$0xff]   ;;  %v236_v8 = vld [vmem:[%s301_s1 + $0x38] sm:$0xff]   ;;  %v237_v9 = vld [vmem:[%s302_s0] sm:$0xff]  }
   0x4   :  { %v148_v12 = vld [vmem:[%s303_s2] sm:$0x1]  ;;  %v152_v14 = vsub.s32 0, %v151_v11 }
   0x5   :  { %v149_v13 = vunpack.c.l.bf16 %v148_v12  ;;  %v190_v16 = vld [vmem:[%s304_s3] sm:$0xff]  }
   0x6   :  { %210 = vmatpush3.bf16.msra.mxu0 %v230_v2  ;;  %v191_v19 = vunpack.c.l.bf16 %v190_v16  ;;  %v192_v21 = vunpack.c.h.bf16 %v190_v16 }
   0x7   :  { %211 = vmatprep.subr.bf16.mxu0 %v238_v0  ;;  %v153_v15 = vrot.slane %v149_v13, %v152_v14 }
   0xa   :  { %212 = vmatpush3.bf16.msra.mxu0 %v231_v3 }
   0xb   :  { %213 = vmatprep.subr.bf16.mxu0 %v238_v0 }
   0xe   :  { %214 = vmatpush3.bf16.msra.mxu0 %v232_v4 }
   0xf   :  { %215 = vmatprep.subr.bf16.mxu0 %v238_v0 }
  0x12   :  { %216 = vmatpush3.bf16.msra.mxu0 %v233_v5 }
  0x13   :  { %217 = vmatprep.subr.bf16.mxu0 %v238_v0 }
  0x16   :  { %218 = vmatpush3.bf16.msra.mxu0 %v234_v6 }
  0x17   :  { %219 = vmatprep.subr.bf16.mxu0 %v238_v0 }
  0x1a   :  { %220 = vmatpush3.bf16.msra.mxu0 %v235_v7 }
  0x1b   :  { %221 = vmatprep.subr.bf16.mxu0 %v238_v0 }
  0x1e   :  { %222 = vmatpush3.bf16.msra.mxu0 %v236_v8 }
  0x21   :  { %224 = vmatmul.mubr.bf16.vlgmr.msra.gmra.mrb[0].mxu0 %v237_v9 }
  0xf4   :  { %v132_v17 = vpop.f32.mrb[0].mxu0 }
  0xf5   :  { %v154_v18 = vadd.f32 %v153_v15, %v132_v17  ;;  %v225_v20 = vpop.f32.mrb[1].mxu0 }
  0xf6   :  { %v135_v22 = vpop.f32.mrb[2].mxu0 }
  0xf7   :  { %v155_v23 = vadd.f32 %v153_v15, %v135_v22  ;;  %v226_v24 = vpop.f32.mrb[3].mxu0  ;;  %v160_v25 = vadd.f32 %v191_v19, %v154_v18 }
  0xf9   :  { %v161_v26 = vadd.f32 %v192_v21, %v155_v23 }
  0xfb   :  { %v196_v27 = vpack.c.bf16 %v161_v26, %v160_v25 }
  0xfd   :  { %197 = vst [vmem:[%s305_s4] sm:$0xff] %v196_v27  }

// kernel: custom_vision_transformer_forward.19
= control target key start
LH: loop header
LB: loop body
LE: loop exit
PB: predicated region body
PF: predicated region fallthrough
CT: control target
= control target key end

     0   :  { %v399_v36 = vlaneseq  ;;  %s698_s1 = inlined_call_operand.vmem [shape: bf16[512,128], index: 1, kind: input, shape index: {}]   ;;  %s699_s0 = inlined_call_operand.vmem [shape: bf16[16,512], index: 0, kind: input, shape index: {}]   ;;  %s700_s2 = inlined_call_operand.vmem [shape: bf16[1,128], index: 2, kind: input, shape index: {}]   ;;  %s701_s3 = inlined_call_operand.vmem [shape: bf16[16,128], index: 3, kind: input, shape index: {}]   ;;  %s702_s4 = inlined_call_operand.vmem [shape: bf16[16,128], index: 4, kind: output, shape index: {}]  }
   0x1   :  { %v518_v0 = vld [vmem:[%s698_s1 + $0x40] sm:$0xff]   ;;  %v522_v4 = vld [vmem:[%s698_s1 + $0x48] sm:$0xff]   ;;  %v526_v8 = vld [vmem:[%s698_s1 + $0x50] sm:$0xff]  }
   0x2   :  { %v519_v1 = vld [vmem:[%s698_s1 + $0xc0] sm:$0xff]   ;;  %474 = vmatprep.subr.bf16.mxu0 %v518_v0  ;;  %v523_v5 = vld [vmem:[%s698_s1 + $0xc8] sm:$0xff]   ;;  %v527_v9 = vld [vmem:[%s698_s1 + $0xd0] sm:$0xff]   ;;  %v400_v37 = vshrl.u32 %v399_v36, 7 }
   0x3   :  { %v520_v2 = vld [vmem:[%s698_s1] sm:$0xff]   ;;  %496 = vmatprep.subr.bf16.mxu1 %v519_v1  ;;  %v524_v6 = vld [vmem:[%s698_s1 + $0x8] sm:$0xff]   ;;  %v528_v10 = vld [vmem:[%s698_s1 + $0x10] sm:$0xff]  }
   0x4   :  { %v521_v3 = vld [vmem:[%s698_s1 + $0x80] sm:$0xff]   ;;  %475 = vmatpush3.bf16.msra.mxu0 %v520_v2  ;;  %v525_v7 = vld [vmem:[%s698_s1 + $0x88] sm:$0xff]   ;;  %v529_v11 = vld [vmem:[%s698_s1 + $0x90] sm:$0xff]   ;;  %v401_v40 = vsub.s32 0, %v400_v37 }
   0x5   :  { %497 = vmatpush3.bf16.msra.mxu1 %v521_v3  ;;  %476 = vmatprep.subr.bf16.mxu0 %v522_v4  ;;  %v530_v12 = vld [vmem:[%s698_s1 + $0x58] sm:$0xff]   ;;  %v534_v16 = vld [vmem:[%s698_s1 + $0x60] sm:$0xff]   ;;  %v538_v20 = vld [vmem:[%s698_s1 + $0x68] sm:$0xff]  }
   0x6   :  { %498 = vmatprep.subr.bf16.mxu1 %v523_v5  ;;  %v531_v13 = vld [vmem:[%s698_s1 + $0xd8] sm:$0xff]   ;;  %v535_v17 = vld [vmem:[%s698_s1 + $0xe0] sm:$0xff]   ;;  %v539_v21 = vld [vmem:[%s698_s1 + $0xe8] sm:$0xff]  }
   0x7   :  { %v532_v14 = vld [vmem:[%s698_s1 + $0x18] sm:$0xff]   ;;  %v536_v18 = vld [vmem:[%s698_s1 + $0x20] sm:$0xff]   ;;  %v540_v22 = vld [vmem:[%s698_s1 + $0x28] sm:$0xff]  }
   0x8   :  { %477 = vmatpush3.bf16.msra.mxu0 %v524_v6  ;;  %v533_v15 = vld [vmem:[%s698_s1 + $0x98] sm:$0xff]   ;;  %v537_v19 = vld [vmem:[%s698_s1 + $0xa0] sm:$0xff]   ;;  %v541_v23 = vld [vmem:[%s698_s1 + $0xa8] sm:$0xff]  }
   0x9   :  { %499 = vmatpush3.bf16.msra.mxu1 %v525_v7  ;;  %478 = vmatprep.subr.bf16.mxu0 %v526_v8  ;;  %v542_v24 = vld [vmem:[%s698_s1 + $0x70] sm:$0xff]   ;;  %v546_v28 = vld [vmem:[%s698_s1 + $0x78] sm:$0xff]   ;;  %v397_v38 = vld [vmem:[%s700_s2] sm:$0x1] }
   0xa   :  { %500 = vmatprep.subr.bf16.mxu1 %v527_v9  ;;  %v543_v25 = vld [vmem:[%s698_s1 + $0xf0] sm:$0xff]   ;;  %v547_v29 = vld [vmem:[%s698_s1 + $0xf8] sm:$0xff]   ;;  %v398_v39 = vunpack.c.l.bf16 %v397_v38  ;;  %v466_v51 = vld [vmem:[%s701_s3] sm:$0xff]  }
   0xb   :  { %v544_v26 = vld [vmem:[%s698_s1 + $0x30] sm:$0xff]   ;;  %v548_v30 = vld [vmem:[%s698_s1 + $0x38] sm:$0xff]   ;;  %v467_v57 = vunpack.c.l.bf16 %v466_v51  ;;  %v468_v59 = vunpack.c.h.bf16 %v466_v51 }
   0xc   :  { %479 = vmatpush3.bf16.msra.mxu0 %v528_v10  ;;  %v545_v27 = vld [vmem:[%s698_s1 + $0xb0] sm:$0xff]   ;;  %v549_v31 = vld [vmem:[%s698_s1 + $0xb8] sm:$0xff]   ;;  %v402_v48 = vrot.slane %v398_v39, %v401_v40 }
   0xd   :  { %501 = vmatpush3.bf16.msra.mxu1 %v529_v11  ;;  %480 = vmatprep.subr.bf16.mxu0 %v530_v12  ;;  %v550_v32 = vld [vmem:[%s699_s0] ss:$16 sps:$4 sm:$0xff]   ;;  %v552_v33 = vld [vmem:[%s699_s0 + $0x4] ss:$16 sps:$4 sm:$0xff]   ;;  %v553_v34 = vld [vmem:[%s699_s0 + $0x8] ss:$16 sps:$4 sm:$0xff]  }
   0xe   :  { %502 = vmatprep.subr.bf16.mxu1 %v531_v13  ;;  %v555_v35 = vld [vmem:[%s699_s0 + $0xc] ss:$16 sps:$4 sm:$0xff]   ;;  %338 = vmatprep.mubr.bf16.mxu0 %v552_v33 }
   0xf   :  { %379 = vmatprep.mubr.bf16.mxu1 %v555_v35 }
  0x10   :  { %481 = vmatpush3.bf16.msra.mxu0 %v532_v14 }
  0x11   :  { %503 = vmatpush3.bf16.msra.mxu1 %v533_v15  ;;  %482 = vmatprep.subr.bf16.mxu0 %v534_v16 }
  0x12   :  { %504 = vmatprep.subr.bf16.mxu1 %v535_v17 }
  0x14   :  { %483 = vmatpush3.bf16.msra.mxu0 %v536_v18 }
  0x15   :  { %505 = vmatpush3.bf16.msra.mxu1 %v537_v19  ;;  %484 = vmatprep.subr.bf16.mxu0 %v538_v20 }
  0x16   :  { %506 = vmatprep.subr.bf16.mxu1 %v539_v21 }
  0x18   :  { %485 = vmatpush3.bf16.msra.mxu0 %v540_v22 }
  0x19   :  { %507 = vmatpush3.bf16.msra.mxu1 %v541_v23  ;;  %486 = vmatprep.subr.bf16.mxu0 %v542_v24 }
  0x1a   :  { %508 = vmatprep.subr.bf16.mxu1 %v543_v25 }
  0x1c   :  { %487 = vmatpush3.bf16.msra.mxu0 %v544_v26 }
  0x1d   :  { %509 = vmatpush3.bf16.msra.mxu1 %v545_v27  ;;  %488 = vmatprep.subr.bf16.mxu0 %v546_v28 }
  0x1e   :  { %510 = vmatprep.subr.bf16.mxu1 %v547_v29 }
  0x20   :  { %489 = vmatpush3.bf16.msra.mxu0 %v548_v30 }
  0x21   :  { %511 = vmatpush3.bf16.msra.mxu1 %v549_v31 }
  0x23   :  { %339 = vmatmul.mubr.bf16.vlgmr.msra.gmra.mrb[0].mxu0 %v550_v32 }
  0x24   :  { %380 = vmatmul.mubr.bf16.vlgmr.msra.gmra.mrb[0].mxu1 %v553_v34 }
  0xf6   :  { %v490_v41 = vpop.f32.mrb[0].mxu0 }
  0xf7   :  { %v512_v42 = vpop.f32.mrb[0].mxu1  ;;  %v491_v43 = vpop.f32.mrb[1].mxu0 }
  0xf8   :  { %v492_v44 = vadd.f32 %v491_v43, %v490_v41  ;;  %v513_v45 = vpop.f32.mrb[1].mxu1  ;;  %v493_v46 = vpop.f32.mrb[2].mxu0 }
  0xf9   :  { %v514_v47 = vadd.f32 %v513_v45, %v512_v42  ;;  %v515_v49 = vpop.f32.mrb[2].mxu1  ;;  %v494_v50 = vpop.f32.mrb[3].mxu0 }
  0xfa   :  { %v495_v52 = vadd.f32 %v494_v50, %v493_v46  ;;  %v516_v53 = vpop.f32.mrb[3].mxu1 }
  0xfb   :  { %v382_v54 = vadd.f32 %v514_v47, %v492_v44  ;;  %v517_v55 = vadd.f32 %v516_v53, %v515_v49 }
  0xfd   :  { %v403_v56 = vadd.f32 %v402_v48, %v382_v54  ;;  %v385_v58 = vadd.f32 %v517_v55, %v495_v52 }
  0xff   :  { %v404_v60 = vadd.f32 %v402_v48, %v385_v58  ;;  %v409_v61 = vadd.f32 %v467_v57, %v403_v56 }
 0x101   :  { %v410_v62 = vadd.f32 %v468_v59, %v404_v60 }
 0x103   :  { %v472_v63 = vpack.c.bf16 %v410_v62, %v409_v61 }
 0x105   :  { %473 = vst [vmem:[%s702_s4] sm:$0xff] %v472_v63  }

// kernel: custom_vision_transformer_forward.18
= control target key start
LH: loop header
LB: loop body
LE: loop exit
PB: predicated region body
PF: predicated region fallthrough
CT: control target
= control target key end

     0   :  { %v615_v37 = vmov 0   ;;  %v50_v48 = vlaneseq  ;;  %s808_s0 = inlined_call_operand.vmem [shape: bf16[16,128], index: 0, kind: input, shape index: {}]   ;;  %s809_s3 = inlined_call_operand.vmem [shape: bf16[128,512], index: 3, kind: input, shape index: {}]   ;;  %s810_s1 = inlined_call_operand.vmem [shape: bf16[1,128], index: 1, kind: input, shape index: {}]   ;;  %s811_s2 = inlined_call_operand.vmem [shape: bf16[1,128], index: 2, kind: input, shape index: {}]   ;;  %s812_s4 = inlined_call_operand.vmem [shape: bf16[1,512], index: 4, kind: input, shape index: {}]   ;;  %s813_s5 = inlined_call_operand.vmem [shape: bf16[16,512], index: 5, kind: output, shape index: {}]  }
   0x1   :  { %v527_v0 = vld [vmem:[%s808_s0] sm:$0xff]   ;;  %v533_v4 = vld [vmem:[%s809_s3 + $0xc] ss:$16 sps:$4 sm:$0xff]   ;;  %v536_v6 = vld [vmem:[%s809_s3 + $0x8] ss:$16 sps:$4 sm:$0xff]   ;;  %328 = vmatprep.mubr.bf16.mxu0 %v615_v37  ;;  %371 = vmatprep.mubr.bf16.mxu1 %v615_v37 }
   0x2   :  { %v528_v1 = vunpack.c.l.bf16 %v527_v0  ;;  %v529_v2 = vunpack.c.h.bf16 %v527_v0  ;;  %v531_v3 = vld [vmem:[%s809_s3 + $0x4] ss:$16 sps:$4 sm:$0xff]   ;;  %v535_v5 = vld [vmem:[%s809_s3] ss:$16 sps:$4 sm:$0xff]   ;;  %339 = vmatprep.subr.bf16.mxu1 %v533_v4  ;;  %v539_v8 = vld [vmem:[%s809_s3 + $0x2c] ss:$16 sps:$4 sm:$0xff]  }
   0x3   :  { %296 = vmatprep.subr.bf16.mxu0 %v531_v3  ;;  %v537_v7 = vld [vmem:[%s809_s3 + $0x24] ss:$16 sps:$4 sm:$0xff]   ;;  %340 = vmatpush1.bf16.msra.mxu1 %v536_v6  ;;  %v541_v17 = vld [vmem:[%s809_s3 + $0x20] ss:$16 sps:$4 sm:$0xff]   ;;  %v542_v18 = vld [vmem:[%s809_s3 + $0x28] ss:$16 sps:$4 sm:$0xff]  }
   0x4   :  { %25 = vadd.xlane.f32.xlu0 %v528_v1  ;;  %297 = vmatpush1.bf16.msra.mxu0 %v535_v5  ;;  %v543_v19 = vld [vmem:[%s809_s3 + $0x44] ss:$16 sps:$4 sm:$0xff]   ;;  %v545_v20 = vld [vmem:[%s809_s3 + $0x4c] ss:$16 sps:$4 sm:$0xff]   ;;  %v547_v21 = vld [vmem:[%s809_s3 + $0x40] ss:$16 sps:$4 sm:$0xff]  }
   0x5   :  { %298 = vmatprep.subr.bf16.mxu0 %v537_v7  ;;  %341 = vmatprep.subr.bf16.mxu1 %v539_v8  ;;  %v548_v22 = vld [vmem:[%s809_s3 + $0x48] ss:$16 sps:$4 sm:$0xff]   ;;  %v549_v23 = vld [vmem:[%s809_s3 + $0x64] ss:$16 sps:$4 sm:$0xff]   ;;  %v551_v24 = vld [vmem:[%s809_s3 + $0x6c] ss:$16 sps:$4 sm:$0xff]  }
   0x6   :  { %v553_v25 = vld [vmem:[%s809_s3 + $0x60] ss:$16 sps:$4 sm:$0xff]   ;;  %v554_v26 = vld [vmem:[%s809_s3 + $0x68] ss:$16 sps:$4 sm:$0xff]   ;;  %v555_v27 = vld [vmem:[%s809_s3 + $0x84] ss:$16 sps:$4 sm:$0xff]  }
   0x7   :  { %342 = vmatpush1.bf16.msra.mxu1 %v542_v18  ;;  %v557_v28 = vld [vmem:[%s809_s3 + $0x8c] ss:$16 sps:$4 sm:$0xff]   ;;  %v559_v29 = vld [vmem:[%s809_s3 + $0x80] ss:$16 sps:$4 sm:$0xff]   ;;  %v560_v30 = vld [vmem:[%s809_s3 + $0x88] ss:$16 sps:$4 sm:$0xff]  }
   0x8   :  { %27 = vadd.xlane.f32.xlu0 %v529_v2  ;;  %299 = vmatpush1.bf16.msra.mxu0 %v541_v17  ;;  %v561_v31 = vld [vmem:[%s809_s3 + $0xa4] ss:$16 sps:$4 sm:$0xff]   ;;  %v563_v32 = vld [vmem:[%s809_s3 + $0xac] ss:$16 sps:$4 sm:$0xff]   ;;  %v565_v33 = vld [vmem:[%s809_s3 + $0xa0] ss:$16 sps:$4 sm:$0xff]  }
   0x9   :  { %300 = vmatprep.subr.bf16.mxu0 %v543_v19  ;;  %343 = vmatprep.subr.bf16.mxu1 %v545_v20  ;;  %v566_v34 = vld [vmem:[%s809_s3 + $0xa8] ss:$16 sps:$4 sm:$0xff]   ;;  %v567_v35 = vld [vmem:[%s809_s3 + $0xc4] ss:$16 sps:$4 sm:$0xff]   ;;  %v569_v36 = vld [vmem:[%s809_s3 + $0xcc] ss:$16 sps:$4 sm:$0xff]  }
   0xa   :  { %v571_v38 = vld [vmem:[%s809_s3 + $0xc0] ss:$16 sps:$4 sm:$0xff]   ;;  %v572_v39 = vld [vmem:[%s809_s3 + $0xc8] ss:$16 sps:$4 sm:$0xff]   ;;  %v573_v40 = vld [vmem:[%s809_s3 + $0xe4] ss:$16 sps:$4 sm:$0xff]  }
   0xb   :  { %344 = vmatpush1.bf16.msra.mxu1 %v548_v22  ;;  %v575_v41 = vld [vmem:[%s809_s3 + $0xec] ss:$16 sps:$4 sm:$0xff]   ;;  %v577_v42 = vld [vmem:[%s809_s3 + $0xe0] ss:$16 sps:$4 sm:$0xff]   ;;  %v578_v43 = vld [vmem:[%s809_s3 + $0xe8] ss:$16 sps:$4 sm:$0xff]  }
   0xc   :  { %301 = vmatpush1.bf16.msra.mxu0 %v547_v21  ;;  %345 = vmatprep.subr.bf16.mxu1 %v551_v24  ;;  %v51_v51 = vshrl.u32 %v50_v48, 7  ;;  %v48_v52 = vld [vmem:[%s810_s1] sm:$0x1] }
   0xd   :  { %302 = vmatprep.subr.bf16.mxu0 %v549_v23  ;;  %v49_v53 = vunpack.c.l.bf16 %v48_v52  ;;  %v56_v55 = vld [vmem:[%s811_s2] sm:$0x1] }
   0xe   :  { %v52_v54 = vsub.s32 0, %v51_v51  ;;  %v57_v59 = vunpack.c.l.bf16 %v56_v55  ;;  %v97_v4 = vld [vmem:[%s812_s4] sm:$0xf]  ;;  %v110_v6 = vsub.s32 4, %v51_v51  ;;  %v106_v7 = vsub.s32 2, %v51_v51 }
   0xf   :  { %346 = vmatpush1.bf16.msra.mxu1 %v554_v26  ;;  %v98_v5 = vunpack.c.l.bf16 %v97_v4  ;;  %v114_v8 = vsub.s32 6, %v51_v51 }
  0x10   :  { %303 = vmatpush1.bf16.msra.mxu0 %v553_v25  ;;  %347 = vmatprep.subr.bf16.mxu1 %v557_v28  ;;  %v53_v58 = vrot.slane %v49_v53, %v52_v54  ;;  %v61_v63 = vrot.slane %v57_v59, %v52_v54 }
  0x11   :  { %304 = vmatprep.subr.bf16.mxu0 %v555_v27 }
  0x13   :  { %348 = vmatpush1.bf16.msra.mxu1 %v560_v30 }
  0x14   :  { %305 = vmatpush1.bf16.msra.mxu0 %v559_v29  ;;  %349 = vmatprep.subr.bf16.mxu1 %v563_v32 }
  0x15   :  { %306 = vmatprep.subr.bf16.mxu0 %v561_v31 }
  0x17   :  { %350 = vmatpush1.bf16.msra.mxu1 %v566_v34 }
  0x18   :  { %307 = vmatpush1.bf16.msra.mxu0 %v565_v33  ;;  %351 = vmatprep.subr.bf16.mxu1 %v569_v36 }
  0x19   :  { %308 = vmatprep.subr.bf16.mxu0 %v567_v35 }
  0x1b   :  { %352 = vmatpush1.bf16.msra.mxu1 %v572_v39 }
  0x1c   :  { %309 = vmatpush1.bf16.msra.mxu0 %v571_v38  ;;  %353 = vmatprep.subr.bf16.mxu1 %v575_v41 }
  0x1d   :  { %310 = vmatprep.subr.bf16.mxu0 %v573_v40 }
  0x1f   :  { %354 = vmatpush1.bf16.msra.mxu1 %v578_v43 }
  0x20   :  { %311 = vmatpush1.bf16.msra.mxu0 %v577_v42 }
  0x91   :  { %v26_v9 = vpop.xlane.xlu0 %25 }
  0x92   :  { %v30_v10 = vmul.f32 0.0078125, %v26_v9  ;;  %v103_v9 = vrot.slane %v98_v5, %v52_v54 }
  0x94   :  { %v667_v11 = vsub.f32 %v528_v1, %v30_v10  ;;  %v111_v10 = vrot.slane %v98_v5, %v110_v6 }
  0x95   :  { %v28_v12 = vpop.xlane.xlu0 %27 }
  0x96   :  { %v31_v13 = vmul.f32 0.0078125, %v28_v12  ;;  %v34_v14 = vmul.f32 %v667_v11, %v667_v11  ;;  %v115_v12 = vrot.slane %v98_v5, %v114_v8 }
  0x98   :  { %v671_v15 = vsub.f32 %v529_v2, %v31_v13  ;;  %36 = vadd.xlane.f32.xlu1 %v34_v14  ;;  %v123_v13 = vrot.slane %v103_v9, %v52_v54  ;;  %v131_v14 = vrot.slane %v111_v10, %v52_v54 }
  0x9a   :  { %v35_v16 = vmul.f32 %v671_v15, %v671_v15 }
  0x9c   :  { %38 = vadd.xlane.f32.xlu1 %v35_v16  ;;  %v135_v16 = vrot.slane %v115_v12, %v52_v54 }
 0x125   :  { %v37_v44 = vpop.xlane.xlu1 %36 }
 0x126   :  { %v40_v45 = vmul.f32 0.0078125, %v37_v44 }
 0x128   :  { %v42_v46 = vadd.f32 1e-05, %v40_v45 }
 0x129   :  { %v39_v47 = vpop.xlane.xlu1 %38 }
 0x12a   :  { %579 = vrsqrt.f32 %v42_v46  ;;  %v41_v49 = vmul.f32 0.0078125, %v39_v47 }
 0x12c   :  { %v43_v50 = vadd.f32 1e-05, %v41_v49 }
 0x12e   :  { %581 = vrsqrt.f32 %v43_v50 }
 0x134   :  { %v580_v56 = vpop.eup %579 }
 0x135   :  { %v46_v57 = vmul.f32 %v580_v56, %v667_v11  ;;  %v107_v11 = vrot.slane %v98_v5, %v106_v7 }
 0x137   :  { %v54_v62 = vmul.f32 %v53_v58, %v46_v57 }
 0x138   :  { %v582_v60 = vpop.eup %581 }
 0x139   :  { %v47_v61 = vmul.f32 %v582_v60, %v671_v15  ;;  %v62_v1 = vadd.f32 %v61_v63, %v54_v62  ;;  %v127_v15 = vrot.slane %v107_v11, %v52_v54 }
 0x13b   :  { %v55_v0 = vmul.f32 %v53_v58, %v47_v61 }
 0x13d   :  { %v63_v2 = vadd.f32 %v61_v63, %v55_v0 }
 0x13f   :  { %v64_v3 = vpack.c.bf16 %v63_v2, %v62_v1 }
 0x141   :  { %329 = vmatmul.mubr.bf16.vlgmr.msra.gmra.mrb[0].mxu0 %v64_v3  ;;  %372 = vmatmul.mubr.bf16.vlgmr.msra.gmra.mrb[0].mxu1 %v64_v3 }
 0x214   :  { %v330_v17 = vpop.f32.mrb[0].mxu0  ;;  %v373_v18 = vpop.f32.mrb[0].mxu1 }
 0x215   :  { %v764_v19 = vadd.f32 %v330_v17, %v123_v13  ;;  %v766_v20 = vadd.f32 %v373_v18, %v131_v14  ;;  %v332_v21 = vpop.f32.mrb[1].mxu0  ;;  %v375_v22 = vpop.f32.mrb[1].mxu1 }
 0x216   :  { %v768_v23 = vadd.f32 %v332_v21, %v127_v15  ;;  %v770_v24 = vadd.f32 %v375_v22, %v135_v16  ;;  %v334_v25 = vpop.f32.mrb[2].mxu0  ;;  %v377_v26 = vpop.f32.mrb[2].mxu1 }
 0x217   :  { %v510_v27 = vmul.f32 -1.702, %v764_v19  ;;  %v512_v28 = vmul.f32 -1.702, %v766_v20  ;;  %v774_v29 = vadd.f32 %v334_v25, %v123_v13  ;;  %v776_v30 = vadd.f32 %v377_v26, %v131_v14  ;;  %v336_v31 = vpop.f32.mrb[3].mxu0  ;;  %v379_v32 = vpop.f32.mrb[3].mxu1 }
 0x218   :  { %v511_v33 = vmul.f32 -1.702, %v768_v23  ;;  %v513_v34 = vmul.f32 -1.702, %v770_v24  ;;  %v780_v35 = vadd.f32 %v336_v31, %v127_v15  ;;  %v782_v36 = vadd.f32 %v379_v32, %v135_v16 }
 0x219   :  { %v398_v37 = vmul.f32 1.442695, %v510_v27  ;;  %v402_v38 = vmul.f32 1.442695, %v512_v28  ;;  %v514_v39 = vmul.f32 -1.702, %v774_v29 }
 0x21a   :  { %v400_v40 = vmul.f32 1.442695, %v511_v33  ;;  %v404_v41 = vmul.f32 1.442695, %v513_v34  ;;  %v516_v42 = vmul.f32 -1.702, %v776_v30 }
 0x21b   :  { %583 = vpow2.f32 %v398_v37  ;;  %v406_v43 = vmul.f32 1.442695, %v514_v39  ;;  %v515_v44 = vmul.f32 -1.702, %v780_v35  ;;  %v517_v45 = vmul.f32 -1.702, %v782_v36 }
 0x21c   :  { %585 = vpow2.f32 %v402_v38  ;;  %v410_v46 = vmul.f32 1.442695, %v516_v42 }
 0x21d   :  { %587 = vpow2.f32 %v400_v40  ;;  %v408_v47 = vmul.f32 1.442695, %v515_v44  ;;  %v412_v48 = vmul.f32 1.442695, %v517_v45 }
 0x21e   :  { %589 = vpow2.f32 %v404_v41 }
 0x21f   :  { %591 = vpow2.f32 %v406_v43 }
 0x220   :  { %593 = vpow2.f32 %v410_v46 }
 0x221   :  { %595 = vpow2.f32 %v408_v47 }
 0x222   :  { %597 = vpow2.f32 %v412_v48 }
 0x225   :  { %v584_v49 = vpop.eup %583 }
 0x226   :  { %v586_v50 = vpop.eup %585  ;;  %v414_v51 = vadd.f32 1.0, %v584_v49 }
 0x227   :  { %v588_v52 = vpop.eup %587  ;;  %v416_v53 = vadd.f32 1.0, %v586_v50 }
 0x228   :  { %v590_v54 = vpop.eup %589  ;;  %599 = vrcp.f32 %v414_v51  ;;  %v415_v55 = vadd.f32 1.0, %v588_v52 }
 0x229   :  { %v592_v56 = vpop.eup %591  ;;  %601 = vrcp.f32 %v416_v53  ;;  %v417_v57 = vadd.f32 1.0, %v590_v54 }
 0x22a   :  { %v594_v58 = vpop.eup %593  ;;  %603 = vrcp.f32 %v415_v55  ;;  %v418_v59 = vadd.f32 1.0, %v592_v56 }
 0x22b   :  { %v596_v60 = vpop.eup %595  ;;  %605 = vrcp.f32 %v417_v57  ;;  %v420_v61 = vadd.f32 1.0, %v594_v58 }
 0x22c   :  { %v598_v62 = vpop.eup %597  ;;  %607 = vrcp.f32 %v418_v59  ;;  %v419_v63 = vadd.f32 1.0, %v596_v60 }
 0x22d   :  { %609 = vrcp.f32 %v420_v61  ;;  %v421_v0 = vadd.f32 1.0, %v598_v62 }
 0x22e   :  { %611 = vrcp.f32 %v419_v63 }
 0x22f   :  { %613 = vrcp.f32 %v421_v0 }
 0x232   :  { %v600_v1 = vpop.eup %599 }
 0x233   :  { %v602_v2 = vpop.eup %601  ;;  %v438_v3 = vmul.f32 %v600_v1, %v764_v19 }
 0x234   :  { %v604_v4 = vpop.eup %603  ;;  %v440_v5 = vmul.f32 %v602_v2, %v766_v20 }
 0x235   :  { %v606_v6 = vpop.eup %605  ;;  %v439_v7 = vmul.f32 %v604_v4, %v768_v23 }
 0x236   :  { %v608_v8 = vpop.eup %607  ;;  %v441_v9 = vmul.f32 %v606_v6, %v770_v24 }
 0x237   :  { %v610_v10 = vpop.eup %609  ;;  %v522_v11 = vpack.c.bf16 %v439_v7, %v438_v3  ;;  %v442_v12 = vmul.f32 %v608_v8, %v774_v29 }
 0x238   :  { %v612_v13 = vpop.eup %611  ;;  %v523_v14 = vpack.c.bf16 %v441_v9, %v440_v5  ;;  %v444_v15 = vmul.f32 %v610_v10, %v776_v30 }
 0x239   :  { %v614_v16 = vpop.eup %613  ;;  %470 = vst [vmem:[%s813_s5] sm:$0xff] %v522_v11  ;;  %v443_v17 = vmul.f32 %v612_v13, %v780_v35 }
 0x23a   :  { %471 = vst [vmem:[%s813_s5 + $0x8] sm:$0xff] %v523_v14  ;;  %v445_v18 = vmul.f32 %v614_v16, %v782_v36 }
 0x23b   :  { %v524_v19 = vpack.c.bf16 %v443_v17, %v442_v12 }
 0x23c   :  { %v525_v20 = vpack.c.bf16 %v445_v18, %v444_v15 }
 0x23d   :  { %472 = vst [vmem:[%s813_s5 + $0x10] sm:$0xff] %v524_v19 }
 0x23e   :  { %473 = vst [vmem:[%s813_s5 + $0x18] sm:$0xff] %v525_v20 }

// kernel: custom_vision_transformer_forward.25
= control target key start
LH: loop header
LB: loop body
LE: loop exit
PB: predicated region body
PF: predicated region fallthrough
CT: control target
= control target key end

     0   :  { %v215_v2 = vmov 0.0   ;;  %vm216_vm0 = vmmov 0   ;;  %v37_v17 = vlaneseq  ;;  %s286_s0 = inlined_call_operand.vmem [shape: bf16[8,128], index: 0, kind: input, shape index: {}]   ;;  %s287_s3 = inlined_call_operand.vmem [shape: bf16[128,128], index: 3, kind: input, shape index: {}]   ;;  %s288_s1 = inlined_call_operand.vmem [shape: bf16[1,128], index: 1, kind: input, shape index: {}]   ;;  %s289_s2 = inlined_call_operand.vmem [shape: bf16[1,128], index: 2, kind: input, shape index: {}]   ;;  %s290_s4 = inlined_call_operand.vmem [shape: bf16[1,128], index: 4, kind: input, shape index: {}]   ;;  %s291_s5 = inlined_call_operand.vmem [shape: bf16[8,128], index: 5, kind: output, shape index: {}]  }
   0x1   :  { %v21_v0 = vld [vmem:[%s286_s0] sm:$0xf]  ;;  %183 = vmatprep.subr.bf16.mxu0 %v215_v2  ;;  %v206_v4 = vld [vmem:[%s287_s3 + $0x8] sm:$0xff]   ;;  %v207_v9 = vld [vmem:[%s287_s3 + $0x10] sm:$0xff]   ;;  %199 = vmatprep.mubr.msk.bf16.mxu0 %vm216_vm0, %v215_v2 }
   0x2   :  { %v22_v1 = vunpack.c.l.bf16 %v21_v0  ;;  %v205_v3 = vld [vmem:[%s287_s3] sm:$0xff]   ;;  %v208_v10 = vld [vmem:[%s287_s3 + $0x18] sm:$0xff]   ;;  %v210_v12 = vld [vmem:[%s287_s3 + $0x28] sm:$0xff]   ;;  %v38_v19 = vshrl.u32 %v37_v17, 7 }
   0x3   :  { %184 = vmatpush3.bf16.msra.mxu0 %v205_v3  ;;  %v209_v11 = vld [vmem:[%s287_s3 + $0x20] sm:$0xff]   ;;  %v211_v13 = vld [vmem:[%s287_s3 + $0x30] sm:$0xff]   ;;  %v212_v14 = vld [vmem:[%s287_s3 + $0x38] sm:$0xff]  }
   0x4   :  { %23 = vadd.xlane.f32.xlu0 %v22_v1  ;;  %185 = vmatprep.subr.bf16.mxu0 %v215_v2  ;;  %v35_v20 = vld [vmem:[%s288_s1] sm:$0x1]  ;;  %v39_v23 = vsub.s32 0, %v38_v19 }
   0x5   :  { %v42_v21 = vld [vmem:[%s289_s2] sm:$0x1]  ;;  %v36_v22 = vunpack.c.l.bf16 %v35_v20 }
   0x6   :  { %v43_v24 = vunpack.c.l.bf16 %v42_v21  ;;  %v66_v32 = vld [vmem:[%s290_s4] sm:$0x1] }
   0x7   :  { %186 = vmatpush3.bf16.msra.mxu0 %v206_v4  ;;  %v40_v25 = vrot.slane %v36_v22, %v39_v23  ;;  %v67_v33 = vunpack.c.l.bf16 %v66_v32 }
   0x8   :  { %187 = vmatprep.subr.bf16.mxu0 %v215_v2  ;;  %v47_v28 = vrot.slane %v43_v24, %v39_v23 }
   0x9   :  { %v71_v34 = vrot.slane %v67_v33, %v39_v23 }
   0xb   :  { %188 = vmatpush3.bf16.msra.mxu0 %v207_v9 }
   0xc   :  { %189 = vmatprep.subr.bf16.mxu0 %v215_v2 }
   0xf   :  { %190 = vmatpush3.bf16.msra.mxu0 %v208_v10 }
  0x10   :  { %191 = vmatprep.subr.bf16.mxu0 %v215_v2 }
  0x13   :  { %192 = vmatpush3.bf16.msra.mxu0 %v209_v11 }
  0x14   :  { %193 = vmatprep.subr.bf16.mxu0 %v215_v2 }
  0x17   :  { %194 = vmatpush3.bf16.msra.mxu0 %v210_v12 }
  0x18   :  { %195 = vmatprep.subr.bf16.mxu0 %v215_v2 }
  0x1b   :  { %196 = vmatpush3.bf16.msra.mxu0 %v211_v13 }
  0x1c   :  { %197 = vmatprep.subr.bf16.mxu0 %v215_v2 }
  0x1f   :  { %198 = vmatpush3.bf16.msra.mxu0 %v212_v14 }
  0x91   :  { %v24_v5 = vpop.xlane.xlu0 %23 }
  0x92   :  { %v26_v6 = vmul.f32 0.0078125, %v24_v5 }
  0x94   :  { %v27_v7 = vsub.f32 %v22_v1, %v26_v6 }
  0x96   :  { %v28_v8 = vmul.f32 %v27_v7, %v27_v7 }
  0x98   :  { %29 = vadd.xlane.f32.xlu0 %v28_v8 }
 0x125   :  { %v30_v15 = vpop.xlane.xlu0 %29 }
 0x126   :  { %v31_v16 = vmul.f32 0.0078125, %v30_v15 }
 0x128   :  { %v32_v18 = vadd.f32 1e-05, %v31_v16 }
 0x12a   :  { %213 = vrsqrt.f32 %v32_v18 }
 0x134   :  { %v214_v26 = vpop.eup %213 }
 0x135   :  { %v34_v27 = vmul.f32 %v214_v26, %v27_v7 }
 0x137   :  { %v41_v29 = vmul.f32 %v40_v25, %v34_v27 }
 0x139   :  { %v48_v30 = vadd.f32 %v47_v28, %v41_v29 }
 0x13b   :  { %v49_v31 = vpack.c.bf16 %v48_v30, %v48_v30 }
 0x13d   :  { %200 = vmatmul.mubr.bf16.vlgmr.msra.gmra.mrb[0].mxu0 %v49_v31 }
 0x210   :  { %v154_v35 = vpop.f32.mrb[0].mxu0 }
 0x211   :  { %v155_v36 = vadd.f32 %v154_v35, %v71_v34  ;;  %v201_v37 = vpop.f32.mrb[1].mxu0 }
 0x212   :  { %v157_v38 = vpop.f32.mrb[2].mxu0 }
 0x213   :  { %v160_v39 = vpack.c.bf16 %v155_v36, %v155_v36  ;;  %v202_v40 = vpop.f32.mrb[3].mxu0 }
 0x215   :  { %161 = vst [vmem:[%s291_s5] sm:$0xf] %v160_v39 }

</bundles_post_ra>
